<compile_context>
chip_gen: v7x
topology: tpu7x:2x2x1
jax: 0.10.0
libtpu: 0.0.40
codegen_flags: <defaults>
</compile_context>

<pallas_src>
import jax
import jax.numpy as jnp
from jax.experimental import pallas as pl
from jax.experimental.pallas import tpu as pltpu

LANE = 128      # f32 vreg lane count  -> packed gate width GW
SUBLANE = 8     # f32 vreg sublane count -> batch padding (Bp)


# ----------------------------------------------------------------------------
# Kernel
# ----------------------------------------------------------------------------
def make_kernel(H, T, Tout, Bp):
    GW = LANE
    H2, H3 = 2 * H, 3 * H

    def gru_update(pre, h):
        """One GRU cell update in the packed-lane layout.

        pre blocks (H lanes each): [r_pre, z_pre, gi_n(+b_in), gh_n(+b_hn)].
        h carries the real hidden state in block 2; every other lane holds
        bounded junk that is killed by zero rows in all weight matrices.
        pltpu.roll follows np.roll semantics: out[i] = in[(i - shift) % n].
        """
        sig = jax.nn.sigmoid(pre)                    # r @ blk0, z @ blk1 (EUP)
        r2 = pltpu.roll(sig, shift=H2, axis=1)       # r   : blk0 -> blk2 (XLU)
        d2 = pltpu.roll(pre, shift=GW - H, axis=1)   # gh_n: blk3 -> blk2 (XLU)
        n_t = jnp.tanh(pre + r2 * d2)                # blk2: n
        z2 = pltpu.roll(sig, shift=H, axis=1)        # z   : blk1 -> blk2 (XLU)
        return n_t + z2 * (h - n_t)                  # blk2: (1-z)*n + z*h

    def kernel(x_ref, e_wih_ref, e_whh_ref, e_bi_ref,
               d_wih_ref, d_bi_ref, wd_ref, bd_ref,
               fc_w_ref, fc_b_ref, out_w_ref, out_b_ref,
               y_ref, gi_scr, fc_scr):
        f32 = jnp.float32

        # Hoisted encoder input projection: one (T*Bp, D) @ (D, 128) MXU matmul
        # for every timestep; only h @ Whh stays on the serial recurrence.
        gi_scr[...] = (jnp.dot(x_ref[...], e_wih_ref[...],
                               preferred_element_type=f32) + e_bi_ref[...])

        # Hoisted constants (JAX does not CSE broadcast_in_dim inside loops).
        lane = jax.lax.broadcasted_iota(jnp.int32, (Bp, GW), 1)
        h_mask = lane < H3                 # keep h lanes, drop fc/junk lanes
        e_whh = e_whh_ref[...]
        wd = wd_ref[...]
        fc_w = fc_w_ref[...]
        fc_b = jnp.broadcast_to(fc_b_ref[...], (Bp, GW))
        bd = jnp.broadcast_to(bd_ref[...], (Bp, GW))

        # TODO(synk): pin e_whh / wd as resident MXU weights across the serial
        #   loops via pltpu.matmul_push_rhs / matmul_acc_lhs / matmul_pop
        #   (v6e/v7x; they already fit one 128x128 tile after packing).
        # TODO(synk): bf16 at the dot boundary (gate math stays f32) for
        #   v5e/v6e throughput, with a relaxed tolerance budget.
        # TODO(synk): for long T / target_length switch the unrolled Python
        #   loops to lax.fori_loop(..., unroll=4..8) and stream x / gi from HBM
        #   in chunks (pl.ANY + pltpu.emit_pipeline) to bound VMEM on v7x.

        # ---------------- encoder recurrence: 1 MXU weight tile / step -------
        h = jnp.zeros((Bp, GW), f32)
        for t in range(T):
            gi = gi_scr[t * Bp:(t + 1) * Bp, :]
            gh = jnp.dot(h, e_whh, preferred_element_type=f32)
            h = gru_update(gi + gh, h)

        # ---------------- decoder step 0: input is x[:, -1, :] ---------------
        x_last = x_ref[(T - 1) * Bp:T * Bp, :]
        gi0 = (jnp.dot(x_last, d_wih_ref[...], preferred_element_type=f32)
               + d_bi_ref[...])
        gh0 = jnp.dot(jnp.where(h_mask, h, 0.0), wd,
                      preferred_element_type=f32)    # fused-fc rows see zeros
        h = gru_update(gi0 + gh0, h)
        fc = jnp.maximum(jnp.dot(h, fc_w, preferred_element_type=f32) + fc_b,
                         0.0)
        fc_scr[0:Bp, :] = fc

        # ------- decoder steps 1..Tout-1: fused autoregressive feedback ------
        # W_fuse = out_w @ dec_wih is folded into wd, so each step runs exactly
        # two serial 128-wide matmuls: [h|fc] @ wd and h @ fc_w.
        for t in range(1, Tout):
            hfc = jnp.where(h_mask, h, fc)   # h @ blk2 | fc @ lanes [3H,3H+FC)
            h = gru_update(jnp.dot(hfc, wd, preferred_element_type=f32) + bd, h)
            fc = jnp.maximum(jnp.dot(h, fc_w, preferred_element_type=f32)
                             + fc_b, 0.0)
            fc_scr[t * Bp:(t + 1) * Bp, :] = fc

        # ------- hoisted output projection + single lane-dense store ---------
        y_ref[...] = (jnp.dot(fc_scr[...], out_w_ref[...],
                              preferred_element_type=f32) + out_b_ref[...])

    return kernel


# ----------------------------------------------------------------------------
# Wrapper
# ----------------------------------------------------------------------------
def net_gru_forward(x, kp, target_length):
    B, T, D = x.shape
    H = kp["H"]
    Bp = max(SUBLANE, ((B + SUBLANE - 1) // SUBLANE) * SUBLANE)

    # Pad batch to the sublane count; go time-major so per-step row slices of
    # the precomputed input projection are sublane-tile aligned.
    x_p = jnp.pad(x.astype(jnp.float32), ((0, Bp - B), (0, 0), (0, 0)))
    x2d = x_p.transpose(1, 0, 2).reshape(T * Bp, D)

    vmem = pl.BlockSpec(memory_space=pltpu.MemorySpace.VMEM)
    # NOTE: gridless single invocation (latency-bound serial recurrence).
    # Throughput scales almost linearly with Bp up to the MXU height, so the
    # biggest lever is simply batching more sequences per call.
    # TODO(synk): for B >= 16 on v7x add a leading "parallel" batch-tile grid
    #   axis (dimension_semantics=("parallel",)) to use both TensorCores.
    y2d = pl.pallas_call(
        make_kernel(H=H, T=T, Tout=target_length, Bp=Bp),
        out_shape=jax.ShapeDtypeStruct((target_length * Bp, LANE), jnp.float32),
        in_specs=[vmem] * 12,
        out_specs=vmem,
        scratch_shapes=[pltpu.VMEM((T * Bp, LANE), jnp.float32),
                        pltpu.VMEM((target_length * Bp, LANE), jnp.float32)],
    )(x2d,
      kp["e_wih_p"], kp["e_whh_p"], kp["e_bi_p"],
      kp["d_wih_p"], kp["d_bi_p"], kp["wd_p"], kp["bd_p"],
      kp["fc_w_p"], kp["fc_b_p"], kp["out_w_p"], kp["out_b_p"])

    # (Tout*Bp, 128) -> (B, Tout, D)
    y = y2d.reshape(target_length, Bp, LANE)[:, :B, :D]
    return jnp.transpose(y, (1, 0, 2))


# ----------------------------------------------------------------------------
# Parameter preparation (PyTorch layout -> packed / fused kernel layout)
# ----------------------------------------------------------------------------
def prepare_kernel_params(p):
    """Packed-lane layout (GW = 128 lanes, blocks are H lanes wide):

      gate matmul output : blk0 = r_pre, blk1 = z_pre, blk2 = gi_n, blk3 = gh_n
      hidden state h     : real values in blk2, other lanes bounded junk
      fused decoder LHS  : h in blk2, fc activations in lanes [3H, 3H+FC)

    Padding hygiene is LOAD-BEARING: every padded row/column below is zero so
    junk lanes of h / hfc can never leak into real lanes.
    """
    H = p["enc_w_hh"].shape[1]
    D = p["enc_w_ih"].shape[1]
    FC = p["fc_w"].shape[0]
    GW = LANE
    assert 4 * H <= GW, "gate packing needs 4*H <= 128 (use per-gate blocks otherwise)"
    assert 3 * H + FC <= GW, "fused decoder LHS needs 3*H + FC <= 128"
    assert D <= LANE

    def emb(shape, *pieces):
        a = jnp.zeros(shape, jnp.float32)
        for r0, c0, blk in pieces:
            a = a.at[r0:r0 + blk.shape[0], c0:c0 + blk.shape[1]].set(
                blk.astype(jnp.float32))
        return a

    def gates(w):            # (..., 3H) -> (r, z, n) in PyTorch gate order
        return jnp.split(w, 3, axis=-1)

    # ---- encoder GRU ----
    e_wir, e_wiz, e_win = gates(p["enc_w_ih"].T)       # (D, H)
    e_whr, e_whz, e_whn = gates(p["enc_w_hh"].T)       # (H, H)
    e_bir, e_biz, e_bin = gates(p["enc_b_ih"][None])   # (1, H)
    e_bhr, e_bhz, e_bhn = gates(p["enc_b_hh"][None])

    e_wih_p = emb((D, GW), (0, 0, e_wir), (0, H, e_wiz), (0, 2 * H, e_win))
    e_bi_p = emb((1, GW), (0, 0, e_bir + e_bhr), (0, H, e_biz + e_bhz),
                 (0, 2 * H, e_bin), (0, 3 * H, e_bhn))
    e_whh_p = emb((GW, GW), (2 * H, 0, e_whr), (2 * H, H, e_whz),
                  (2 * H, 3 * H, e_whn))

    # ---- decoder GRU + fc / out heads ----
    d_wir, d_wiz, d_win = gates(p["dec_w_ih"].T)
    d_whr, d_whz, d_whn = gates(p["dec_w_hh"].T)
    d_bir, d_biz, d_bin = gates(p["dec_b_ih"][None])
    d_bhr, d_bhz, d_bhn = gates(p["dec_b_hh"][None])

    d_wih_p = emb((D, GW), (0, 0, d_wir), (0, H, d_wiz), (0, 2 * H, d_win))
    d_bi_p = emb((1, GW), (0, 0, d_bir + d_bhr), (0, H, d_biz + d_bhz),
                 (0, 2 * H, d_bin), (0, 3 * H, d_bhn))

    fc_w_t = p["fc_w"].T            # (H, FC)
    out_w_t = p["out_w"].T          # (FC, D)
    out_b = p["out_b"][None]        # (1, D)

    # Fused autoregressive feedback: dec_in = fc @ out_w.T + out_b, so
    # gi = fc @ (out_w.T @ w_ih.T) + (out_b @ w_ih.T + b_ih)   (per gate).
    hi = jax.lax.Precision.HIGHEST
    wf = [jnp.dot(out_w_t, w, precision=hi) for w in (d_wir, d_wiz, d_win)]
    bf = [jnp.dot(out_b, w, precision=hi) + b
          for w, b in zip((d_wir, d_wiz, d_win), (d_bir, d_biz, d_bin))]

    wd_p = emb((GW, GW),
               (2 * H, 0, d_whr), (2 * H, H, d_whz), (2 * H, 3 * H, d_whn),
               (3 * H, 0, wf[0]), (3 * H, H, wf[1]), (3 * H, 2 * H, wf[2]))
    bd_p = emb((1, GW), (0, 0, bf[0] + d_bhr), (0, H, bf[1] + d_bhz),
               (0, 2 * H, bf[2]), (0, 3 * H, d_bhn))

    fc_w_p = emb((GW, GW), (2 * H, 3 * H, fc_w_t))      # h rows -> fc lanes
    fc_b_p = emb((1, GW), (0, 3 * H, p["fc_b"][None]))
    out_w_p = emb((GW, LANE), (3 * H, 0, out_w_t))      # fc rows -> first D lanes
    out_b_p = emb((1, LANE), (0, 0, out_b))

    return {
        "H": H,
        "e_wih_p": e_wih_p, "e_whh_p": e_whh_p, "e_bi_p": e_bi_p,
        "d_wih_p": d_wih_p, "d_bi_p": d_bi_p,
        "wd_p": wd_p, "bd_p": bd_p,
        "fc_w_p": fc_w_p, "fc_b_p": fc_b_p,
        "out_w_p": out_w_p, "out_b_p": out_b_p,
    }


def init_raw_params(key, input_size, hidden_size, fc_units):
    # Deterministic synthetic weights in PyTorch layout (no checkpoint loading).
    ks = jax.random.split(key, 12)
    s = 0.2
    H3 = 3 * hidden_size
    return {
        "enc_w_ih": s * jax.random.normal(ks[0], (H3, input_size), jnp.float32),
        "enc_w_hh": s * jax.random.normal(ks[1], (H3, hidden_size), jnp.float32),
        "enc_b_ih": s * jax.random.normal(ks[2], (H3,), jnp.float32),
        "enc_b_hh": s * jax.random.normal(ks[3], (H3,), jnp.float32),
        "dec_w_ih": s * jax.random.normal(ks[4], (H3, input_size), jnp.float32),
        "dec_w_hh": s * jax.random.normal(ks[5], (H3, hidden_size), jnp.float32),
        "dec_b_ih": s * jax.random.normal(ks[6], (H3,), jnp.float32),
        "dec_b_hh": s * jax.random.normal(ks[7], (H3,), jnp.float32),
        "fc_w": s * jax.random.normal(ks[8], (fc_units, hidden_size), jnp.float32),
        "fc_b": s * jax.random.normal(ks[9], (fc_units,), jnp.float32),
        "out_w": s * jax.random.normal(ks[10], (input_size, fc_units), jnp.float32),
        "out_b": s * jax.random.normal(ks[11], (input_size,), jnp.float32),
    }


def reference_forward(x, p, target_length):
    # Pure-JAX reference with PyTorch GRU semantics (raw, unfused weights).
    H = p["enc_w_hh"].shape[1]

    def cell(xt, h, w_ih, w_hh, b_ih, b_hh):
        gi = xt @ w_ih.T + b_ih
        gh = h @ w_hh.T + b_hh
        r = jax.nn.sigmoid(gi[:, :H] + gh[:, :H])
        z = jax.nn.sigmoid(gi[:, H:2 * H] + gh[:, H:2 * H])
        n = jnp.tanh(gi[:, 2 * H:] + r * gh[:, 2 * H:])
        return (1.0 - z) * n + z * h

    B, T, D = x.shape
    h = jnp.zeros((B, H), jnp.float32)
    for ei in range(T):
        h = cell(x[:, ei, :], h, p["enc_w_ih"], p["enc_w_hh"],
                 p["enc_b_ih"], p["enc_b_hh"])
    dec_in = x[:, -1, :]
    outs = []
    for _ in range(target_length):
        h = cell(dec_in, h, p["dec_w_ih"], p["dec_w_hh"],
                 p["dec_b_ih"], p["dec_b_hh"])
        fc = jnp.maximum(h @ p["fc_w"].T + p["fc_b"], 0.0)
        dec_in = fc @ p["out_w"].T + p["out_b"]
        outs.append(dec_in)
    return jnp.stack(outs, axis=1)


if __name__ == "__main__":
    # Small shapes consistent with the module: x is [batch, seq_len, features].
    B, T, D = 2, 8, 4
    H, FC = 32, 16
    TARGET_LEN = 6

    key = jax.random.PRNGKey(0)
    kx, kw = jax.random.split(key)
    x = jax.random.normal(kx, (B, T, D), dtype=jnp.float32)

    raw = init_raw_params(kw, input_size=D, hidden_size=H, fc_units=FC)
    kernel_params = prepare_kernel_params(raw)

    y = net_gru_forward(x, kernel_params, TARGET_LEN)
    y = jax.block_until_ready(y)

    y_ref = reference_forward(x, raw, TARGET_LEN)
    assert y.shape == (B, TARGET_LEN, D)
    err = float(jnp.max(jnp.abs(y - y_ref)))
    assert jnp.allclose(y, y_ref, atol=2e-4, rtol=2e-4), err

    print("KERNEL_OK")
</pallas_src>

<mosaic_0001>
module attributes {stable_mosaic.version = 11 : i64} {
  func.func @kernel(%arg0: memref<64x4xf32, #tpu.memory_space<vmem>>, %arg1: memref<4x128xf32, #tpu.memory_space<vmem>>, %arg2: memref<128x128xf32, #tpu.memory_space<vmem>>, %arg3: memref<1x128xf32, #tpu.memory_space<vmem>>, %arg4: memref<4x128xf32, #tpu.memory_space<vmem>>, %arg5: memref<1x128xf32, #tpu.memory_space<vmem>>, %arg6: memref<128x128xf32, #tpu.memory_space<vmem>>, %arg7: memref<1x128xf32, #tpu.memory_space<vmem>>, %arg8: memref<128x128xf32, #tpu.memory_space<vmem>>, %arg9: memref<1x128xf32, #tpu.memory_space<vmem>>, %arg10: memref<128x128xf32, #tpu.memory_space<vmem>>, %arg11: memref<1x128xf32, #tpu.memory_space<vmem>>, %arg12: memref<48x128xf32, #tpu.memory_space<vmem>>, %arg13: memref<64x128xf32, #tpu.memory_space<vmem>>, %arg14: memref<48x128xf32, #tpu.memory_space<vmem>>) attributes {dimension_semantics = [], scalar_prefetch = 0 : i64, scratch_operands = 2 : i64, tpu.core_type = #tpu.core_type<tc>} {
    %c0 = arith.constant 0 : index
    %c0_0 = arith.constant 0 : index
    %0 = vector.load %arg0[%c0, %c0_0] : memref<64x4xf32, #tpu.memory_space<vmem>>, vector<64x4xf32>
    %c0_1 = arith.constant 0 : index
    %c0_2 = arith.constant 0 : index
    %1 = vector.load %arg1[%c0_1, %c0_2] : memref<4x128xf32, #tpu.memory_space<vmem>>, vector<4x128xf32>
    %cst = arith.constant dense<0.000000e+00> : vector<64x128xf32>
    %2 = tpu.matmul %0, %1, %cst {dimension_numbers = #tpu.dot_dimension_numbers<[1], [0], [0], [1], [0, 0, 1, 1], [], []>} : vector<64x4xf32>, vector<4x128xf32>, vector<64x128xf32> -> vector<64x128xf32>
    %c0_3 = arith.constant 0 : index
    %c0_4 = arith.constant 0 : index
    %3 = vector.load %arg3[%c0_3, %c0_4] : memref<1x128xf32, #tpu.memory_space<vmem>>, vector<1x128xf32>
    %4 = vector.broadcast %3 : vector<1x128xf32> to vector<64x128xf32>
    %5 = arith.addf %2, %4 : vector<64x128xf32>
    %c0_5 = arith.constant 0 : index
    %c0_6 = arith.constant 0 : index
    %6 = vector.load %arg13[%c0_5, %c0_6] : memref<64x128xf32, #tpu.memory_space<vmem>>, vector<64x128xf32>
    tpu.vector_store %arg13[%c0_5, %c0_6], %5 {strides = array<i32>} : memref<64x128xf32, #tpu.memory_space<vmem>>, vector<64x128xf32>,
    %7 = tpu.iota {dimensions = array<i32: 1>} : vector<8x128xi32>
    %c96_i32 = arith.constant 96 : i32
    %8 = vector.broadcast %c96_i32 : i32 to vector<8x128xi32>
    %9 = arith.cmpi slt, %7, %8 : vector<8x128xi32>
    %c0_7 = arith.constant 0 : index
    %c0_8 = arith.constant 0 : index
    %10 = vector.load %arg2[%c0_7, %c0_8] : memref<128x128xf32, #tpu.memory_space<vmem>>, vector<128x128xf32>
    %c0_9 = arith.constant 0 : index
    %c0_10 = arith.constant 0 : index
    %11 = vector.load %arg6[%c0_9, %c0_10] : memref<128x128xf32, #tpu.memory_space<vmem>>, vector<128x128xf32>
    %c0_11 = arith.constant 0 : index
    %c0_12 = arith.constant 0 : index
    %12 = vector.load %arg8[%c0_11, %c0_12] : memref<128x128xf32, #tpu.memory_space<vmem>>, vector<128x128xf32>
    %c0_13 = arith.constant 0 : index
    %c0_14 = arith.constant 0 : index
    %13 = vector.load %arg9[%c0_13, %c0_14] : memref<1x128xf32, #tpu.memory_space<vmem>>, vector<1x128xf32>
    %14 = vector.shape_cast %13 : vector<1x128xf32> to vector<1x128xf32>
    %15 = vector.broadcast %14 : vector<1x128xf32> to vector<8x128xf32>
    %c0_15 = arith.constant 0 : index
    %c0_16 = arith.constant 0 : index
    %16 = vector.load %arg7[%c0_15, %c0_16] : memref<1x128xf32, #tpu.memory_space<vmem>>, vector<1x128xf32>
    %17 = vector.shape_cast %16 : vector<1x128xf32> to vector<1x128xf32>
    %18 = vector.broadcast %17 : vector<1x128xf32> to vector<8x128xf32>
    %cst_17 = arith.constant 0.000000e+00 : f32
    %19 = vector.broadcast %cst_17 : f32 to vector<8x128xf32>
    %c0_18 = arith.constant 0 : index
    %c0_19 = arith.constant 0 : index
    %20 = vector.load %arg13[%c0_18, %c0_19] : memref<64x128xf32, #tpu.memory_space<vmem>>, vector<8x128xf32>
    %cst_20 = arith.constant dense<0.000000e+00> : vector<8x128xf32>
    %21 = tpu.matmul %19, %10, %cst_20 {dimension_numbers = #tpu.dot_dimension_numbers<[1], [0], [0], [1], [0, 0, 1, 1], [], []>} : vector<8x128xf32>, vector<128x128xf32>, vector<8x128xf32> -> vector<8x128xf32>
    %22 = arith.addf %20, %21 : vector<8x128xf32>
    %23 = arith.negf %22 : vector<8x128xf32>
    %24 = math.exp %23 : vector<8x128xf32>
    %cst_21 = arith.constant 1.000000e+00 : f32
    %25 = vector.broadcast %cst_21 : f32 to vector<8x128xf32>
    %26 = arith.addf %25, %24 : vector<8x128xf32>
    %27 = arith.divf %25, %26 : vector<8x128xf32>
    %c64_i32 = arith.constant 64 : i32
    %28 = tpu.dynamic_rotate %27 by %c64_i32 dim 1 : vector<8x128xf32>, i32 -> vector<8x128xf32>
    %c96_i32_22 = arith.constant 96 : i32
    %29 = tpu.dynamic_rotate %22 by %c96_i32_22 dim 1 : vector<8x128xf32>, i32 -> vector<8x128xf32>
    %30 = arith.mulf %28, %29 : vector<8x128xf32>
    %31 = arith.addf %22, %30 : vector<8x128xf32>
    %32 = math.tanh %31 : vector<8x128xf32>
    %c32_i32 = arith.constant 32 : i32
    %33 = tpu.dynamic_rotate %27 by %c32_i32 dim 1 : vector<8x128xf32>, i32 -> vector<8x128xf32>
    %34 = arith.subf %19, %32 : vector<8x128xf32>
    %35 = arith.mulf %33, %34 : vector<8x128xf32>
    %36 = arith.addf %32, %35 : vector<8x128xf32>
    %c8 = arith.constant 8 : index
    %c0_23 = arith.constant 0 : index
    %37 = vector.load %arg13[%c8, %c0_23] : memref<64x128xf32, #tpu.memory_space<vmem>>, vector<8x128xf32>
    %cst_24 = arith.constant dense<0.000000e+00> : vector<8x128xf32>
    %38 = tpu.matmul %36, %10, %cst_24 {dimension_numbers = #tpu.dot_dimension_numbers<[1], [0], [0], [1], [0, 0, 1, 1], [], []>} : vector<8x128xf32>, vector<128x128xf32>, vector<8x128xf32> -> vector<8x128xf32>
    %39 = arith.addf %37, %38 : vector<8x128xf32>
    %40 = arith.negf %39 : vector<8x128xf32>
    %41 = math.exp %40 : vector<8x128xf32>
    %cst_25 = arith.constant 1.000000e+00 : f32
    %42 = vector.broadcast %cst_25 : f32 to vector<8x128xf32>
    %43 = arith.addf %42, %41 : vector<8x128xf32>
    %44 = arith.divf %42, %43 : vector<8x128xf32>
    %c64_i32_26 = arith.constant 64 : i32
    %45 = tpu.dynamic_rotate %44 by %c64_i32_26 dim 1 : vector<8x128xf32>, i32 -> vector<8x128xf32>
    %c96_i32_27 = arith.constant 96 : i32
    %46 = tpu.dynamic_rotate %39 by %c96_i32_27 dim 1 : vector<8x128xf32>, i32 -> vector<8x128xf32>
    %47 = arith.mulf %45, %46 : vector<8x128xf32>
    %48 = arith.addf %39, %47 : vector<8x128xf32>
    %49 = math.tanh %48 : vector<8x128xf32>
    %c32_i32_28 = arith.constant 32 : i32
    %50 = tpu.dynamic_rotate %44 by %c32_i32_28 dim 1 : vector<8x128xf32>, i32 -> vector<8x128xf32>
    %51 = arith.subf %36, %49 : vector<8x128xf32>
    %52 = arith.mulf %50, %51 : vector<8x128xf32>
    %53 = arith.addf %49, %52 : vector<8x128xf32>
    %c16 = arith.constant 16 : index
    %c0_29 = arith.constant 0 : index
    %54 = vector.load %arg13[%c16, %c0_29] : memref<64x128xf32, #tpu.memory_space<vmem>>, vector<8x128xf32>
    %cst_30 = arith.constant dense<0.000000e+00> : vector<8x128xf32>
    %55 = tpu.matmul %53, %10, %cst_30 {dimension_numbers = #tpu.dot_dimension_numbers<[1], [0], [0], [1], [0, 0, 1, 1], [], []>} : vector<8x128xf32>, vector<128x128xf32>, vector<8x128xf32> -> vector<8x128xf32>
    %56 = arith.addf %54, %55 : vector<8x128xf32>
    %57 = arith.negf %56 : vector<8x128xf32>
    %58 = math.exp %57 : vector<8x128xf32>
    %cst_31 = arith.constant 1.000000e+00 : f32
    %59 = vector.broadcast %cst_31 : f32 to vector<8x128xf32>
    %60 = arith.addf %59, %58 : vector<8x128xf32>
    %61 = arith.divf %59, %60 : vector<8x128xf32>
    %c64_i32_32 = arith.constant 64 : i32
    %62 = tpu.dynamic_rotate %61 by %c64_i32_32 dim 1 : vector<8x128xf32>, i32 -> vector<8x128xf32>
    %c96_i32_33 = arith.constant 96 : i32
    %63 = tpu.dynamic_rotate %56 by %c96_i32_33 dim 1 : vector<8x128xf32>, i32 -> vector<8x128xf32>
    %64 = arith.mulf %62, %63 : vector<8x128xf32>
    %65 = arith.addf %56, %64 : vector<8x128xf32>
    %66 = math.tanh %65 : vector<8x128xf32>
    %c32_i32_34 = arith.constant 32 : i32
    %67 = tpu.dynamic_rotate %61 by %c32_i32_34 dim 1 : vector<8x128xf32>, i32 -> vector<8x128xf32>
    %68 = arith.subf %53, %66 : vector<8x128xf32>
    %69 = arith.mulf %67, %68 : vector<8x128xf32>
    %70 = arith.addf %66, %69 : vector<8x128xf32>
    %c24 = arith.constant 24 : index
    %c0_35 = arith.constant 0 : index
    %71 = vector.load %arg13[%c24, %c0_35] : memref<64x128xf32, #tpu.memory_space<vmem>>, vector<8x128xf32>
    %cst_36 = arith.constant dense<0.000000e+00> : vector<8x128xf32>
    %72 = tpu.matmul %70, %10, %cst_36 {dimension_numbers = #tpu.dot_dimension_numbers<[1], [0], [0], [1], [0, 0, 1, 1], [], []>} : vector<8x128xf32>, vector<128x128xf32>, vector<8x128xf32> -> vector<8x128xf32>
    %73 = arith.addf %71, %72 : vector<8x128xf32>
    %74 = arith.negf %73 : vector<8x128xf32>
    %75 = math.exp %74 : vector<8x128xf32>
    %cst_37 = arith.constant 1.000000e+00 : f32
    %76 = vector.broadcast %cst_37 : f32 to vector<8x128xf32>
    %77 = arith.addf %76, %75 : vector<8x128xf32>
    %78 = arith.divf %76, %77 : vector<8x128xf32>
    %c64_i32_38 = arith.constant 64 : i32
    %79 = tpu.dynamic_rotate %78 by %c64_i32_38 dim 1 : vector<8x128xf32>, i32 -> vector<8x128xf32>
    %c96_i32_39 = arith.constant 96 : i32
    %80 = tpu.dynamic_rotate %73 by %c96_i32_39 dim 1 : vector<8x128xf32>, i32 -> vector<8x128xf32>
    %81 = arith.mulf %79, %80 : vector<8x128xf32>
    %82 = arith.addf %73, %81 : vector<8x128xf32>
    %83 = math.tanh %82 : vector<8x128xf32>
    %c32_i32_40 = arith.constant 32 : i32
    %84 = tpu.dynamic_rotate %78 by %c32_i32_40 dim 1 : vector<8x128xf32>, i32 -> vector<8x128xf32>
    %85 = arith.subf %70, %83 : vector<8x128xf32>
    %86 = arith.mulf %84, %85 : vector<8x128xf32>
    %87 = arith.addf %83, %86 : vector<8x128xf32>
    %c32 = arith.constant 32 : index
    %c0_41 = arith.constant 0 : index
    %88 = vector.load %arg13[%c32, %c0_41] : memref<64x128xf32, #tpu.memory_space<vmem>>, vector<8x128xf32>
    %cst_42 = arith.constant dense<0.000000e+00> : vector<8x128xf32>
    %89 = tpu.matmul %87, %10, %cst_42 {dimension_numbers = #tpu.dot_dimension_numbers<[1], [0], [0], [1], [0, 0, 1, 1], [], []>} : vector<8x128xf32>, vector<128x128xf32>, vector<8x128xf32> -> vector<8x128xf32>
    %90 = arith.addf %88, %89 : vector<8x128xf32>
    %91 = arith.negf %90 : vector<8x128xf32>
    %92 = math.exp %91 : vector<8x128xf32>
    %cst_43 = arith.constant 1.000000e+00 : f32
    %93 = vector.broadcast %cst_43 : f32 to vector<8x128xf32>
    %94 = arith.addf %93, %92 : vector<8x128xf32>
    %95 = arith.divf %93, %94 : vector<8x128xf32>
    %c64_i32_44 = arith.constant 64 : i32
    %96 = tpu.dynamic_rotate %95 by %c64_i32_44 dim 1 : vector<8x128xf32>, i32 -> vector<8x128xf32>
    %c96_i32_45 = arith.constant 96 : i32
    %97 = tpu.dynamic_rotate %90 by %c96_i32_45 dim 1 : vector<8x128xf32>, i32 -> vector<8x128xf32>
    %98 = arith.mulf %96, %97 : vector<8x128xf32>
    %99 = arith.addf %90, %98 : vector<8x128xf32>
    %100 = math.tanh %99 : vector<8x128xf32>
    %c32_i32_46 = arith.constant 32 : i32
    %101 = tpu.dynamic_rotate %95 by %c32_i32_46 dim 1 : vector<8x128xf32>, i32 -> vector<8x128xf32>
    %102 = arith.subf %87, %100 : vector<8x128xf32>
    %103 = arith.mulf %101, %102 : vector<8x128xf32>
    %104 = arith.addf %100, %103 : vector<8x128xf32>
    %c40 = arith.constant 40 : index
    %c0_47 = arith.constant 0 : index
    %105 = vector.load %arg13[%c40, %c0_47] : memref<64x128xf32, #tpu.memory_space<vmem>>, vector<8x128xf32>
    %cst_48 = arith.constant dense<0.000000e+00> : vector<8x128xf32>
    %106 = tpu.matmul %104, %10, %cst_48 {dimension_numbers = #tpu.dot_dimension_numbers<[1], [0], [0], [1], [0, 0, 1, 1], [], []>} : vector<8x128xf32>, vector<128x128xf32>, vector<8x128xf32> -> vector<8x128xf32>
    %107 = arith.addf %105, %106 : vector<8x128xf32>
    %108 = arith.negf %107 : vector<8x128xf32>
    %109 = math.exp %108 : vector<8x128xf32>
    %cst_49 = arith.constant 1.000000e+00 : f32
    %110 = vector.broadcast %cst_49 : f32 to vector<8x128xf32>
    %111 = arith.addf %110, %109 : vector<8x128xf32>
    %112 = arith.divf %110, %111 : vector<8x128xf32>
    %c64_i32_50 = arith.constant 64 : i32
    %113 = tpu.dynamic_rotate %112 by %c64_i32_50 dim 1 : vector<8x128xf32>, i32 -> vector<8x128xf32>
    %c96_i32_51 = arith.constant 96 : i32
    %114 = tpu.dynamic_rotate %107 by %c96_i32_51 dim 1 : vector<8x128xf32>, i32 -> vector<8x128xf32>
    %115 = arith.mulf %113, %114 : vector<8x128xf32>
    %116 = arith.addf %107, %115 : vector<8x128xf32>
    %117 = math.tanh %116 : vector<8x128xf32>
    %c32_i32_52 = arith.constant 32 : i32
    %118 = tpu.dynamic_rotate %112 by %c32_i32_52 dim 1 : vector<8x128xf32>, i32 -> vector<8x128xf32>
    %119 = arith.subf %104, %117 : vector<8x128xf32>
    %120 = arith.mulf %118, %119 : vector<8x128xf32>
    %121 = arith.addf %117, %120 : vector<8x128xf32>
    %c48 = arith.constant 48 : index
    %c0_53 = arith.constant 0 : index
    %122 = vector.load %arg13[%c48, %c0_53] : memref<64x128xf32, #tpu.memory_space<vmem>>, vector<8x128xf32>
    %cst_54 = arith.constant dense<0.000000e+00> : vector<8x128xf32>
    %123 = tpu.matmul %121, %10, %cst_54 {dimension_numbers = #tpu.dot_dimension_numbers<[1], [0], [0], [1], [0, 0, 1, 1], [], []>} : vector<8x128xf32>, vector<128x128xf32>, vector<8x128xf32> -> vector<8x128xf32>
    %124 = arith.addf %122, %123 : vector<8x128xf32>
    %125 = arith.negf %124 : vector<8x128xf32>
    %126 = math.exp %125 : vector<8x128xf32>
    %cst_55 = arith.constant 1.000000e+00 : f32
    %127 = vector.broadcast %cst_55 : f32 to vector<8x128xf32>
    %128 = arith.addf %127, %126 : vector<8x128xf32>
    %129 = arith.divf %127, %128 : vector<8x128xf32>
    %c64_i32_56 = arith.constant 64 : i32
    %130 = tpu.dynamic_rotate %129 by %c64_i32_56 dim 1 : vector<8x128xf32>, i32 -> vector<8x128xf32>
    %c96_i32_57 = arith.constant 96 : i32
    %131 = tpu.dynamic_rotate %124 by %c96_i32_57 dim 1 : vector<8x128xf32>, i32 -> vector<8x128xf32>
    %132 = arith.mulf %130, %131 : vector<8x128xf32>
    %133 = arith.addf %124, %132 : vector<8x128xf32>
    %134 = math.tanh %133 : vector<8x128xf32>
    %c32_i32_58 = arith.constant 32 : i32
    %135 = tpu.dynamic_rotate %129 by %c32_i32_58 dim 1 : vector<8x128xf32>, i32 -> vector<8x128xf32>
    %136 = arith.subf %121, %134 : vector<8x128xf32>
    %137 = arith.mulf %135, %136 : vector<8x128xf32>
    %138 = arith.addf %134, %137 : vector<8x128xf32>
    %c56 = arith.constant 56 : index
    %c0_59 = arith.constant 0 : index
    %139 = vector.load %arg13[%c56, %c0_59] : memref<64x128xf32, #tpu.memory_space<vmem>>, vector<8x128xf32>
    %cst_60 = arith.constant dense<0.000000e+00> : vector<8x128xf32>
    %140 = tpu.matmul %138, %10, %cst_60 {dimension_numbers = #tpu.dot_dimension_numbers<[1], [0], [0], [1], [0, 0, 1, 1], [], []>} : vector<8x128xf32>, vector<128x128xf32>, vector<8x128xf32> -> vector<8x128xf32>
    %141 = arith.addf %139, %140 : vector<8x128xf32>
    %142 = arith.negf %141 : vector<8x128xf32>
    %143 = math.exp %142 : vector<8x128xf32>
    %cst_61 = arith.constant 1.000000e+00 : f32
    %144 = vector.broadcast %cst_61 : f32 to vector<8x128xf32>
    %145 = arith.addf %144, %143 : vector<8x128xf32>
    %146 = arith.divf %144, %145 : vector<8x128xf32>
    %c64_i32_62 = arith.constant 64 : i32
    %147 = tpu.dynamic_rotate %146 by %c64_i32_62 dim 1 : vector<8x128xf32>, i32 -> vector<8x128xf32>
    %c96_i32_63 = arith.constant 96 : i32
    %148 = tpu.dynamic_rotate %141 by %c96_i32_63 dim 1 : vector<8x128xf32>, i32 -> vector<8x128xf32>
    %149 = arith.mulf %147, %148 : vector<8x128xf32>
    %150 = arith.addf %141, %149 : vector<8x128xf32>
    %151 = math.tanh %150 : vector<8x128xf32>
    %c32_i32_64 = arith.constant 32 : i32
    %152 = tpu.dynamic_rotate %146 by %c32_i32_64 dim 1 : vector<8x128xf32>, i32 -> vector<8x128xf32>
    %153 = arith.subf %138, %151 : vector<8x128xf32>
    %154 = arith.mulf %152, %153 : vector<8x128xf32>
    %155 = arith.addf %151, %154 : vector<8x128xf32>
    %c56_65 = arith.constant 56 : index
    %c0_66 = arith.constant 0 : index
    %156 = vector.load %arg0[%c56_65, %c0_66] : memref<64x4xf32, #tpu.memory_space<vmem>>, vector<8x4xf32>
    %c0_67 = arith.constant 0 : index
    %c0_68 = arith.constant 0 : index
    %157 = vector.load %arg4[%c0_67, %c0_68] : memref<4x128xf32, #tpu.memory_space<vmem>>, vector<4x128xf32>
    %cst_69 = arith.constant dense<0.000000e+00> : vector<8x128xf32>
    %158 = tpu.matmul %156, %157, %cst_69 {dimension_numbers = #tpu.dot_dimension_numbers<[1], [0], [0], [1], [0, 0, 1, 1], [], []>} : vector<8x4xf32>, vector<4x128xf32>, vector<8x128xf32> -> vector<8x128xf32>
    %c0_70 = arith.constant 0 : index
    %c0_71 = arith.constant 0 : index
    %159 = vector.load %arg5[%c0_70, %c0_71] : memref<1x128xf32, #tpu.memory_space<vmem>>, vector<1x128xf32>
    %160 = vector.broadcast %159 : vector<1x128xf32> to vector<8x128xf32>
    %161 = arith.addf %158, %160 : vector<8x128xf32>
    %cst_72 = arith.constant 0.000000e+00 : f32
    %162 = vector.broadcast %cst_72 : f32 to vector<8x128xf32>
    %163 = arith.select %9, %155, %162 : vector<8x128xi1>, vector<8x128xf32>
    %cst_73 = arith.constant dense<0.000000e+00> : vector<8x128xf32>
    %164 = tpu.matmul %163, %11, %cst_73 {dimension_numbers = #tpu.dot_dimension_numbers<[1], [0], [0], [1], [0, 0, 1, 1], [], []>} : vector<8x128xf32>, vector<128x128xf32>, vector<8x128xf32> -> vector<8x128xf32>
    %165 = arith.addf %161, %164 : vector<8x128xf32>
    %166 = arith.negf %165 : vector<8x128xf32>
    %167 = math.exp %166 : vector<8x128xf32>
    %cst_74 = arith.constant 1.000000e+00 : f32
    %168 = vector.broadcast %cst_74 : f32 to vector<8x128xf32>
    %169 = arith.addf %168, %167 : vector<8x128xf32>
    %170 = arith.divf %168, %169 : vector<8x128xf32>
    %c64_i32_75 = arith.constant 64 : i32
    %171 = tpu.dynamic_rotate %170 by %c64_i32_75 dim 1 : vector<8x128xf32>, i32 -> vector<8x128xf32>
    %c96_i32_76 = arith.constant 96 : i32
    %172 = tpu.dynamic_rotate %165 by %c96_i32_76 dim 1 : vector<8x128xf32>, i32 -> vector<8x128xf32>
    %173 = arith.mulf %171, %172 : vector<8x128xf32>
    %174 = arith.addf %165, %173 : vector<8x128xf32>
    %175 = math.tanh %174 : vector<8x128xf32>
    %c32_i32_77 = arith.constant 32 : i32
    %176 = tpu.dynamic_rotate %170 by %c32_i32_77 dim 1 : vector<8x128xf32>, i32 -> vector<8x128xf32>
    %177 = arith.subf %155, %175 : vector<8x128xf32>
    %178 = arith.mulf %176, %177 : vector<8x128xf32>
    %179 = arith.addf %175, %178 : vector<8x128xf32>
    %cst_78 = arith.constant dense<0.000000e+00> : vector<8x128xf32>
    %180 = tpu.matmul %179, %12, %cst_78 {dimension_numbers = #tpu.dot_dimension_numbers<[1], [0], [0], [1], [0, 0, 1, 1], [], []>} : vector<8x128xf32>, vector<128x128xf32>, vector<8x128xf32> -> vector<8x128xf32>
    %181 = arith.addf %180, %15 : vector<8x128xf32>
    %cst_79 = arith.constant 0.000000e+00 : f32
    %182 = vector.broadcast %cst_79 : f32 to vector<8x128xf32>
    %183 = arith.maximumf %181, %182 : vector<8x128xf32>
    %c0_80 = arith.constant 0 : index
    %c0_81 = arith.constant 0 : index
    %184 = vector.load %arg14[%c0_80, %c0_81] : memref<48x128xf32, #tpu.memory_space<vmem>>, vector<8x128xf32>
    tpu.vector_store %arg14[%c0_80, %c0_81], %183 {strides = array<i32>} : memref<48x128xf32, #tpu.memory_space<vmem>>, vector<8x128xf32>,
    %185 = arith.select %9, %179, %183 : vector<8x128xi1>, vector<8x128xf32>
    %cst_82 = arith.constant dense<0.000000e+00> : vector<8x128xf32>
    %186 = tpu.matmul %185, %11, %cst_82 {dimension_numbers = #tpu.dot_dimension_numbers<[1], [0], [0], [1], [0, 0, 1, 1], [], []>} : vector<8x128xf32>, vector<128x128xf32>, vector<8x128xf32> -> vector<8x128xf32>
    %187 = arith.addf %186, %18 : vector<8x128xf32>
    %188 = arith.negf %187 : vector<8x128xf32>
    %189 = math.exp %188 : vector<8x128xf32>
    %cst_83 = arith.constant 1.000000e+00 : f32
    %190 = vector.broadcast %cst_83 : f32 to vector<8x128xf32>
    %191 = arith.addf %190, %189 : vector<8x128xf32>
    %192 = arith.divf %190, %191 : vector<8x128xf32>
    %c64_i32_84 = arith.constant 64 : i32
    %193 = tpu.dynamic_rotate %192 by %c64_i32_84 dim 1 : vector<8x128xf32>, i32 -> vector<8x128xf32>
    %c96_i32_85 = arith.constant 96 : i32
    %194 = tpu.dynamic_rotate %187 by %c96_i32_85 dim 1 : vector<8x128xf32>, i32 -> vector<8x128xf32>
    %195 = arith.mulf %193, %194 : vector<8x128xf32>
    %196 = arith.addf %187, %195 : vector<8x128xf32>
    %197 = math.tanh %196 : vector<8x128xf32>
    %c32_i32_86 = arith.constant 32 : i32
    %198 = tpu.dynamic_rotate %192 by %c32_i32_86 dim 1 : vector<8x128xf32>, i32 -> vector<8x128xf32>
    %199 = arith.subf %179, %197 : vector<8x128xf32>
    %200 = arith.mulf %198, %199 : vector<8x128xf32>
    %201 = arith.addf %197, %200 : vector<8x128xf32>
    %cst_87 = arith.constant dense<0.000000e+00> : vector<8x128xf32>
    %202 = tpu.matmul %201, %12, %cst_87 {dimension_numbers = #tpu.dot_dimension_numbers<[1], [0], [0], [1], [0, 0, 1, 1], [], []>} : vector<8x128xf32>, vector<128x128xf32>, vector<8x128xf32> -> vector<8x128xf32>
    %203 = arith.addf %202, %15 : vector<8x128xf32>
    %cst_88 = arith.constant 0.000000e+00 : f32
    %204 = vector.broadcast %cst_88 : f32 to vector<8x128xf32>
    %205 = arith.maximumf %203, %204 : vector<8x128xf32>
    %c8_89 = arith.constant 8 : index
    %c0_90 = arith.constant 0 : index
    %206 = vector.load %arg14[%c8_89, %c0_90] : memref<48x128xf32, #tpu.memory_space<vmem>>, vector<8x128xf32>
    tpu.vector_store %arg14[%c8_89, %c0_90], %205 {strides = array<i32>} : memref<48x128xf32, #tpu.memory_space<vmem>>, vector<8x128xf32>,
    %207 = arith.select %9, %201, %205 : vector<8x128xi1>, vector<8x128xf32>
    %cst_91 = arith.constant dense<0.000000e+00> : vector<8x128xf32>
    %208 = tpu.matmul %207, %11, %cst_91 {dimension_numbers = #tpu.dot_dimension_numbers<[1], [0], [0], [1], [0, 0, 1, 1], [], []>} : vector<8x128xf32>, vector<128x128xf32>, vector<8x128xf32> -> vector<8x128xf32>
    %209 = arith.addf %208, %18 : vector<8x128xf32>
    %210 = arith.negf %209 : vector<8x128xf32>
    %211 = math.exp %210 : vector<8x128xf32>
    %cst_92 = arith.constant 1.000000e+00 : f32
    %212 = vector.broadcast %cst_92 : f32 to vector<8x128xf32>
    %213 = arith.addf %212, %211 : vector<8x128xf32>
    %214 = arith.divf %212, %213 : vector<8x128xf32>
    %c64_i32_93 = arith.constant 64 : i32
    %215 = tpu.dynamic_rotate %214 by %c64_i32_93 dim 1 : vector<8x128xf32>, i32 -> vector<8x128xf32>
    %c96_i32_94 = arith.constant 96 : i32
    %216 = tpu.dynamic_rotate %209 by %c96_i32_94 dim 1 : vector<8x128xf32>, i32 -> vector<8x128xf32>
    %217 = arith.mulf %215, %216 : vector<8x128xf32>
    %218 = arith.addf %209, %217 : vector<8x128xf32>
    %219 = math.tanh %218 : vector<8x128xf32>
    %c32_i32_95 = arith.constant 32 : i32
    %220 = tpu.dynamic_rotate %214 by %c32_i32_95 dim 1 : vector<8x128xf32>, i32 -> vector<8x128xf32>
    %221 = arith.subf %201, %219 : vector<8x128xf32>
    %222 = arith.mulf %220, %221 : vector<8x128xf32>
    %223 = arith.addf %219, %222 : vector<8x128xf32>
    %cst_96 = arith.constant dense<0.000000e+00> : vector<8x128xf32>
    %224 = tpu.matmul %223, %12, %cst_96 {dimension_numbers = #tpu.dot_dimension_numbers<[1], [0], [0], [1], [0, 0, 1, 1], [], []>} : vector<8x128xf32>, vector<128x128xf32>, vector<8x128xf32> -> vector<8x128xf32>
    %225 = arith.addf %224, %15 : vector<8x128xf32>
    %cst_97 = arith.constant 0.000000e+00 : f32
    %226 = vector.broadcast %cst_97 : f32 to vector<8x128xf32>
    %227 = arith.maximumf %225, %226 : vector<8x128xf32>
    %c16_98 = arith.constant 16 : index
    %c0_99 = arith.constant 0 : index
    %228 = vector.load %arg14[%c16_98, %c0_99] : memref<48x128xf32, #tpu.memory_space<vmem>>, vector<8x128xf32>
    tpu.vector_store %arg14[%c16_98, %c0_99], %227 {strides = array<i32>} : memref<48x128xf32, #tpu.memory_space<vmem>>, vector<8x128xf32>,
    %229 = arith.select %9, %223, %227 : vector<8x128xi1>, vector<8x128xf32>
    %cst_100 = arith.constant dense<0.000000e+00> : vector<8x128xf32>
    %230 = tpu.matmul %229, %11, %cst_100 {dimension_numbers = #tpu.dot_dimension_numbers<[1], [0], [0], [1], [0, 0, 1, 1], [], []>} : vector<8x128xf32>, vector<128x128xf32>, vector<8x128xf32> -> vector<8x128xf32>
    %231 = arith.addf %230, %18 : vector<8x128xf32>
    %232 = arith.negf %231 : vector<8x128xf32>
    %233 = math.exp %232 : vector<8x128xf32>
    %cst_101 = arith.constant 1.000000e+00 : f32
    %234 = vector.broadcast %cst_101 : f32 to vector<8x128xf32>
    %235 = arith.addf %234, %233 : vector<8x128xf32>
    %236 = arith.divf %234, %235 : vector<8x128xf32>
    %c64_i32_102 = arith.constant 64 : i32
    %237 = tpu.dynamic_rotate %236 by %c64_i32_102 dim 1 : vector<8x128xf32>, i32 -> vector<8x128xf32>
    %c96_i32_103 = arith.constant 96 : i32
    %238 = tpu.dynamic_rotate %231 by %c96_i32_103 dim 1 : vector<8x128xf32>, i32 -> vector<8x128xf32>
    %239 = arith.mulf %237, %238 : vector<8x128xf32>
    %240 = arith.addf %231, %239 : vector<8x128xf32>
    %241 = math.tanh %240 : vector<8x128xf32>
    %c32_i32_104 = arith.constant 32 : i32
    %242 = tpu.dynamic_rotate %236 by %c32_i32_104 dim 1 : vector<8x128xf32>, i32 -> vector<8x128xf32>
    %243 = arith.subf %223, %241 : vector<8x128xf32>
    %244 = arith.mulf %242, %243 : vector<8x128xf32>
    %245 = arith.addf %241, %244 : vector<8x128xf32>
    %cst_105 = arith.constant dense<0.000000e+00> : vector<8x128xf32>
    %246 = tpu.matmul %245, %12, %cst_105 {dimension_numbers = #tpu.dot_dimension_numbers<[1], [0], [0], [1], [0, 0, 1, 1], [], []>} : vector<8x128xf32>, vector<128x128xf32>, vector<8x128xf32> -> vector<8x128xf32>
    %247 = arith.addf %246, %15 : vector<8x128xf32>
    %cst_106 = arith.constant 0.000000e+00 : f32
    %248 = vector.broadcast %cst_106 : f32 to vector<8x128xf32>
    %249 = arith.maximumf %247, %248 : vector<8x128xf32>
    %c24_107 = arith.constant 24 : index
    %c0_108 = arith.constant 0 : index
    %250 = vector.load %arg14[%c24_107, %c0_108] : memref<48x128xf32, #tpu.memory_space<vmem>>, vector<8x128xf32>
    tpu.vector_store %arg14[%c24_107, %c0_108], %249 {strides = array<i32>} : memref<48x128xf32, #tpu.memory_space<vmem>>, vector<8x128xf32>,
    %251 = arith.select %9, %245, %249 : vector<8x128xi1>, vector<8x128xf32>
    %cst_109 = arith.constant dense<0.000000e+00> : vector<8x128xf32>
    %252 = tpu.matmul %251, %11, %cst_109 {dimension_numbers = #tpu.dot_dimension_numbers<[1], [0], [0], [1], [0, 0, 1, 1], [], []>} : vector<8x128xf32>, vector<128x128xf32>, vector<8x128xf32> -> vector<8x128xf32>
    %253 = arith.addf %252, %18 : vector<8x128xf32>
    %254 = arith.negf %253 : vector<8x128xf32>
    %255 = math.exp %254 : vector<8x128xf32>
    %cst_110 = arith.constant 1.000000e+00 : f32
    %256 = vector.broadcast %cst_110 : f32 to vector<8x128xf32>
    %257 = arith.addf %256, %255 : vector<8x128xf32>
    %258 = arith.divf %256, %257 : vector<8x128xf32>
    %c64_i32_111 = arith.constant 64 : i32
    %259 = tpu.dynamic_rotate %258 by %c64_i32_111 dim 1 : vector<8x128xf32>, i32 -> vector<8x128xf32>
    %c96_i32_112 = arith.constant 96 : i32
    %260 = tpu.dynamic_rotate %253 by %c96_i32_112 dim 1 : vector<8x128xf32>, i32 -> vector<8x128xf32>
    %261 = arith.mulf %259, %260 : vector<8x128xf32>
    %262 = arith.addf %253, %261 : vector<8x128xf32>
    %263 = math.tanh %262 : vector<8x128xf32>
    %c32_i32_113 = arith.constant 32 : i32
    %264 = tpu.dynamic_rotate %258 by %c32_i32_113 dim 1 : vector<8x128xf32>, i32 -> vector<8x128xf32>
    %265 = arith.subf %245, %263 : vector<8x128xf32>
    %266 = arith.mulf %264, %265 : vector<8x128xf32>
    %267 = arith.addf %263, %266 : vector<8x128xf32>
    %cst_114 = arith.constant dense<0.000000e+00> : vector<8x128xf32>
    %268 = tpu.matmul %267, %12, %cst_114 {dimension_numbers = #tpu.dot_dimension_numbers<[1], [0], [0], [1], [0, 0, 1, 1], [], []>} : vector<8x128xf32>, vector<128x128xf32>, vector<8x128xf32> -> vector<8x128xf32>
    %269 = arith.addf %268, %15 : vector<8x128xf32>
    %cst_115 = arith.constant 0.000000e+00 : f32
    %270 = vector.broadcast %cst_115 : f32 to vector<8x128xf32>
    %271 = arith.maximumf %269, %270 : vector<8x128xf32>
    %c32_116 = arith.constant 32 : index
    %c0_117 = arith.constant 0 : index
    %272 = vector.load %arg14[%c32_116, %c0_117] : memref<48x128xf32, #tpu.memory_space<vmem>>, vector<8x128xf32>
    tpu.vector_store %arg14[%c32_116, %c0_117], %271 {strides = array<i32>} : memref<48x128xf32, #tpu.memory_space<vmem>>, vector<8x128xf32>,
    %273 = arith.select %9, %267, %271 : vector<8x128xi1>, vector<8x128xf32>
    %cst_118 = arith.constant dense<0.000000e+00> : vector<8x128xf32>
    %274 = tpu.matmul %273, %11, %cst_118 {dimension_numbers = #tpu.dot_dimension_numbers<[1], [0], [0], [1], [0, 0, 1, 1], [], []>} : vector<8x128xf32>, vector<128x128xf32>, vector<8x128xf32> -> vector<8x128xf32>
    %275 = arith.addf %274, %18 : vector<8x128xf32>
    %276 = arith.negf %275 : vector<8x128xf32>
    %277 = math.exp %276 : vector<8x128xf32>
    %cst_119 = arith.constant 1.000000e+00 : f32
    %278 = vector.broadcast %cst_119 : f32 to vector<8x128xf32>
    %279 = arith.addf %278, %277 : vector<8x128xf32>
    %280 = arith.divf %278, %279 : vector<8x128xf32>
    %c64_i32_120 = arith.constant 64 : i32
    %281 = tpu.dynamic_rotate %280 by %c64_i32_120 dim 1 : vector<8x128xf32>, i32 -> vector<8x128xf32>
    %c96_i32_121 = arith.constant 96 : i32
    %282 = tpu.dynamic_rotate %275 by %c96_i32_121 dim 1 : vector<8x128xf32>, i32 -> vector<8x128xf32>
    %283 = arith.mulf %281, %282 : vector<8x128xf32>
    %284 = arith.addf %275, %283 : vector<8x128xf32>
    %285 = math.tanh %284 : vector<8x128xf32>
    %c32_i32_122 = arith.constant 32 : i32
    %286 = tpu.dynamic_rotate %280 by %c32_i32_122 dim 1 : vector<8x128xf32>, i32 -> vector<8x128xf32>
    %287 = arith.subf %267, %285 : vector<8x128xf32>
    %288 = arith.mulf %286, %287 : vector<8x128xf32>
    %289 = arith.addf %285, %288 : vector<8x128xf32>
    %cst_123 = arith.constant dense<0.000000e+00> : vector<8x128xf32>
    %290 = tpu.matmul %289, %12, %cst_123 {dimension_numbers = #tpu.dot_dimension_numbers<[1], [0], [0], [1], [0, 0, 1, 1], [], []>} : vector<8x128xf32>, vector<128x128xf32>, vector<8x128xf32> -> vector<8x128xf32>
    %291 = arith.addf %290, %15 : vector<8x128xf32>
    %cst_124 = arith.constant 0.000000e+00 : f32
    %292 = vector.broadcast %cst_124 : f32 to vector<8x128xf32>
    %293 = arith.maximumf %291, %292 : vector<8x128xf32>
    %c40_125 = arith.constant 40 : index
    %c0_126 = arith.constant 0 : index
    %294 = vector.load %arg14[%c40_125, %c0_126] : memref<48x128xf32, #tpu.memory_space<vmem>>, vector<8x128xf32>
    tpu.vector_store %arg14[%c40_125, %c0_126], %293 {strides = array<i32>} : memref<48x128xf32, #tpu.memory_space<vmem>>, vector<8x128xf32>,
    %c0_127 = arith.constant 0 : index
    %c0_128 = arith.constant 0 : index
    %295 = vector.load %arg14[%c0_127, %c0_128] : memref<48x128xf32, #tpu.memory_space<vmem>>, vector<48x128xf32>
    %c0_129 = arith.constant 0 : index
    %c0_130 = arith.constant 0 : index
    %296 = vector.load %arg10[%c0_129, %c0_130] : memref<128x128xf32, #tpu.memory_space<vmem>>, vector<128x128xf32>
    %cst_131 = arith.constant dense<0.000000e+00> : vector<48x128xf32>
    %297 = tpu.matmul %295, %296, %cst_131 {dimension_numbers = #tpu.dot_dimension_numbers<[1], [0], [0], [1], [0, 0, 1, 1], [], []>} : vector<48x128xf32>, vector<128x128xf32>, vector<48x128xf32> -> vector<48x128xf32>
    %c0_132 = arith.constant 0 : index
    %c0_133 = arith.constant 0 : index
    %298 = vector.load %arg11[%c0_132, %c0_133] : memref<1x128xf32, #tpu.memory_space<vmem>>, vector<1x128xf32>
    %299 = vector.broadcast %298 : vector<1x128xf32> to vector<48x128xf32>
    %300 = arith.addf %297, %299 : vector<48x128xf32>
    %c0_134 = arith.constant 0 : index
    %c0_135 = arith.constant 0 : index
    %301 = vector.load %arg12[%c0_134, %c0_135] : memref<48x128xf32, #tpu.memory_space<vmem>>, vector<48x128xf32>
    tpu.vector_store %arg12[%c0_134, %c0_135], %300 {strides = array<i32>} : memref<48x128xf32, #tpu.memory_space<vmem>>, vector<48x128xf32>,
    return
  }
}

</mosaic_0001>

<bundles_post_ra>
// kernel: tpu_custom_call.1
= control target key start
LH: loop header
LB: loop body
LE: loop exit
PB: predicated region body
PF: predicated region fallthrough
CT: control target
= control target key end

     0   :  { %17 = vsyncpa [#allocation5], 0  ;;  %s4921_s0 = inlined_call_operand.vmem [shape: f32[64,4], index: 0, kind: input, shape index: {}]   ;;  %s4922_s1 = inlined_call_operand.vmem [shape: f32[4,128], index: 1, kind: input, shape index: {}]   ;;  %s4923_s2 = inlined_call_operand.hbm [shape: f32[128,128], index: 2, kind: input, shape index: {}]   ;;  %s4924_s3 = inlined_call_operand.vmem [shape: f32[1,128], index: 3, kind: input, shape index: {}]   ;;  %s4925_s4 = inlined_call_operand.vmem [shape: f32[4,128], index: 4, kind: input, shape index: {}]   ;;  %s4926_s5 = inlined_call_operand.vmem [shape: f32[1,128], index: 5, kind: input, shape index: {}]   ;;  %s4927_s6 = inlined_call_operand.hbm [shape: f32[128,128], index: 6, kind: input, shape index: {}]   ;;  %s4928_s7 = inlined_call_operand.vmem [shape: f32[1,128], index: 7, kind: input, shape index: {}]   ;;  %s4929_s8 = inlined_call_operand.hbm [shape: f32[128,128], index: 8, kind: input, shape index: {}]   ;;  %s4930_s9 = inlined_call_operand.vmem [shape: f32[1,128], index: 9, kind: input, shape index: {}]   ;;  %s4931_s10 = inlined_call_operand.hbm [shape: f32[128,128], index: 10, kind: input, shape index: {}]   ;;  %s4932_s11 = inlined_call_operand.vmem [shape: f32[1,128], index: 11, kind: input, shape index: {}]   ;;  %s4933_s12 = inlined_call_operand.hbm [shape: f32[48,128], index: 12, kind: output, shape index: {}]  }
   0x1   :  { %18 = vsyncpa [#allocation8], 0 }
   0x2   :  { %19 = vsyncpa [#allocation11], 0 }
   0x3   :  { %20 = vsyncpa [#allocation6], 0  ;;  %s4134_s21 = smov [#allocation7]   ;;  %s4135_s23 = smov [#allocation4]  }
   0x4   :  { %s48_s22 = sshll.u32 %s4134_s21, 4  ;;  %s30_s24 = sshll.u32 %s4135_s23, 4  ;;  %s49_s22 = int_to_ptr.vmem [resolvable:$true] %s48_s22  ;;  %s4212_s24 = int_to_ptr.vmem [resolvable:$true] %s30_s24 }
   0x5   :  { %s4016_s27 = scalar_lea.hbm %s4927_s6, 2048 }
   0x6   :  { %p4017_p0 = scmp.ne.s32.totalorder %s4927_s6, %s4016_s27  ;;  %p4020_p1 = scmp.lt.u32.totalorder %s4016_s27, %s4927_s6 }
   0x8   :  { %p4022_p2 = pnand %p4020_p1, %p4017_p0 }
   0xa   :  { %4025 = shalt.err (!%p4022_p2)
}
   0xb   :  { %s4026_s14 = scalar_lea.vmem %s49_s22, 2048  ;;  %p4031_p4 = scmp.lt.s32.totalorder %s49_s22, %s49_s22 }
   0xc   :  { %p4027_p3 = scmp.ne.s32.totalorder %s49_s22, %s4026_s14  ;;  %p4032_p5 = scmp.lt.s32.totalorder %s4026_s14, %s4026_s14 }
   0xe   :  { %p4033_p6 = por %p4032_p5, %p4031_p4 }
  0x10   :  { %p4034_p7 = pnand %p4033_p6, %p4027_p3 }
  0x12   :  { %4037 = shalt.err (!%p4034_p7)
}
  0x13   :  { %s4136_s15 = smov 128   ;;  %s4137_s16 = smov 8  }
  0x14   :  { %54 = dma.hbm_to_vmem [thread:$0]  %s4927_s6, 2048, %s49_s22, [#allocation8], %s4136_s15, %s4136_s15, %s4137_s16  }
  0x15   :  { %s4038_s21 = scalar_lea.hbm %s4923_s2, 2048 }
  0x16   :  { %p4039_p8 = scmp.ne.s32.totalorder %s4923_s2, %s4038_s21  ;;  %p4042_p9 = scmp.lt.u32.totalorder %s4038_s21, %s4923_s2 }
  0x18   :  { %p4044_p10 = pnand %p4042_p9, %p4039_p8 }
  0x1a   :  { %4047 = shalt.err (!%p4044_p10)
}
  0x1b   :  { %s4048_s28 = scalar_lea.vmem %s4212_s24, 2048  ;;  %p4053_p12 = scmp.lt.s32.totalorder %s4212_s24, %s4212_s24 }
  0x1c   :  { %p4049_p11 = scmp.ne.s32.totalorder %s4212_s24, %s4048_s28  ;;  %p4054_p13 = scmp.lt.s32.totalorder %s4048_s28, %s4048_s28 }
  0x1e   :  { %p4055_p0 = por %p4054_p13, %p4053_p12 }
  0x20   :  { %p4056_p1 = pnand %p4055_p0, %p4049_p11 }
  0x22   :  { %4059 = shalt.err (!%p4056_p1)
}
  0x23   :  { %36 = dma.hbm_to_vmem [thread:$0]  %s4923_s2, 2048, %s4212_s24, [#allocation5], %s4136_s15, %s4136_s15, %s4137_s16  }
  0x24   :  { %s4138_s29 = smov [#allocation9]   ;;  %s4139_s13 = smov [#allocation10]  }
  0x25   :  { %s62_s30 = sshll.u32 %s4138_s29, 4  ;;  %s76_s14 = sshll.u32 %s4139_s13, 4  ;;  %s63_s30 = int_to_ptr.vmem [resolvable:$true] %s62_s30  ;;  %s4249_s14 = int_to_ptr.vmem [resolvable:$true] %s76_s14 }
  0x26   :  { %s4060_s19 = scalar_lea.hbm %s4929_s8, 2048 }
  0x27   :  { %p4061_p2 = scmp.ne.s32.totalorder %s4929_s8, %s4060_s19  ;;  %p4064_p3 = scmp.lt.u32.totalorder %s4060_s19, %s4929_s8 }
  0x29   :  { %p4066_p4 = pnand %p4064_p3, %p4061_p2 }
  0x2b   :  { %4069 = shalt.err (!%p4066_p4)
}
  0x2c   :  { %s4070_s2 = scalar_lea.vmem %s63_s30, 2048  ;;  %p4075_p6 = scmp.lt.s32.totalorder %s63_s30, %s63_s30 }
  0x2d   :  { %p4071_p5 = scmp.ne.s32.totalorder %s63_s30, %s4070_s2  ;;  %p4076_p7 = scmp.lt.s32.totalorder %s4070_s2, %s4070_s2 }
  0x2f   :  { %p4077_p8 = por %p4076_p7, %p4075_p6 }
  0x31   :  { %p4078_p9 = pnand %p4077_p8, %p4071_p5 }
  0x33   :  { %4081 = shalt.err (!%p4078_p9)
}
  0x34   :  { %68 = dma.hbm_to_vmem [thread:$0]  %s4929_s8, 2048, %s63_s30, [#allocation8], %s4136_s15, %s4136_s15, %s4137_s16  }
  0x35   :  { %s4082_s6 = scalar_lea.hbm %s4931_s10, 2048 }
  0x36   :  { %p4083_p10 = scmp.ne.s32.totalorder %s4931_s10, %s4082_s6  ;;  %p4086_p11 = scmp.lt.u32.totalorder %s4082_s6, %s4931_s10 }
  0x38   :  { %p4088_p12 = pnand %p4086_p11, %p4083_p10 }
  0x3a   :  { %4091 = shalt.err (!%p4088_p12)
}
  0x3b   :  { %s4092_s18 = scalar_lea.vmem %s4249_s14, 2048  ;;  %p4097_p0 = scmp.lt.s32.totalorder %s4249_s14, %s4249_s14 }
  0x3c   :  { %p4093_p13 = scmp.ne.s32.totalorder %s4249_s14, %s4092_s18  ;;  %p4098_p1 = scmp.lt.s32.totalorder %s4092_s18, %s4092_s18 }
  0x3e   :  { %p4099_p2 = por %p4098_p1, %p4097_p0 }
  0x40   :  { %p4100_p3 = pnand %p4099_p2, %p4093_p13 }
  0x42   :  { %4103 = shalt.err (!%p4100_p3)
}
  0x43   :  { %82 = dma.hbm_to_vmem [thread:$0]  %s4931_s10, 2048, %s4249_s14, [#allocation11], %s4136_s15, %s4136_s15, %s4137_s16  }
  0x44   :  { %4126 = dma.done.wait [#allocation5], 2048  }
  0x45   :  { %4127 = vsyncadd [#allocation5], 4294965248 }
  0x46   :  { %4128 = dma.done.wait [#allocation8], 4096  }
  0x47   :  { %4129 = vsyncadd [#allocation8], 4294963200 }
  0x48   :  { %4130 = dma.done.wait [#allocation11], 2048  }
  0x49   :  { %4131 = vsyncadd [#allocation11], 4294965248  ;;  %v4140_v0 = vmov 0.0|0.0   ;;  %vm4141_vm0 = vmmov 0   ;;  %v4142_v1 = vmov 0.0   ;;  %v258_v2 = vld [vmem:[#allocation4] sm:$0xff] }
  0x4a   :  { %3405 = vmatprep.subr.bf16.mxu1 %v4140_v0  ;;  %2691 = vmatprep.mubr.msk.f32.mxu1 %vm4141_vm0, %v4142_v1  ;;  %v259_v3 = vld [vmem:[#allocation4 + $0x8] sm:$0xff]  ;;  %v260_v4 = vld [vmem:[#allocation4 + $0x10] sm:$0xff]  ;;  %v261_v6 = vld [vmem:[#allocation4 + $0x18] sm:$0xff]  ;;  %vm138_vm1 = vcmask 1043456   ;;  %vm113_vm2 = vcmask 31744   ;;  %s4143_s2 = smov 32  }
  0x4b   :  { %v4289_v5 = vpack.c.bf16 %v259_v3, %v258_v2  ;;  %v4292_v7 = vpack.c.bf16 %v261_v6, %v260_v4  ;;  %v262_v8 = vld [vmem:[#allocation4 + $0x20] sm:$0xff]  ;;  %v263_v9 = vld [vmem:[#allocation4 + $0x28] sm:$0xff]  ;;  %v105_v10 = vld [vmem:[%s4922_s1] sm:$0xf]  ;;  %s4144_s24 = smov 64   ;;  %s4145_s26 = smov 96  }
  0x4c   :  { %2645 = vmatprep.subr.msk.mxu0 %vm138_vm1, %v105_v10  ;;  %v97_v11 = vld [vmem:[%s4921_s0] sm:$0xff]  ;;  %v98_v12 = vld [vmem:[%s4921_s0 + $0x8] sm:$0xff]  ;;  %v4308_v13 = vpack.c.bf16 %v263_v9, %v262_v8  ;;  %v266_v17 = vld [vmem:[#allocation4 + $0x40] sm:$0xff] }
  0x4d   :  { %3407 = vmatpush3.bf16.msra.mxu1 %v4289_v5  ;;  %2646 = vmatpush3.msk.msra.mxu0 %vm138_vm1, %v105_v10  ;;  %v264_v14 = vld [vmem:[#allocation4 + $0x30] sm:$0xff]  ;;  %v265_v15 = vld [vmem:[#allocation4 + $0x38] sm:$0xff]  ;;  %v267_v18 = vld [vmem:[#allocation4 + $0x48] sm:$0xff] }
  0x4e   :  { %3408 = vmatprep.subr.bf16.mxu1 %v4140_v0  ;;  %2647 = vmatprep.mubr.msk.f32.mxu0 %vm113_vm2, %v97_v11  ;;  %v4316_v16 = vpack.c.bf16 %v265_v15, %v264_v14  ;;  %v4322_v19 = vpack.c.bf16 %v267_v18, %v266_v17  ;;  %v268_v20 = vld [vmem:[#allocation4 + $0x50] sm:$0xff]  ;;  %v269_v21 = vld [vmem:[#allocation4 + $0x58] sm:$0xff]  ;;  %v270_v23 = vld [vmem:[#allocation4 + $0x60] sm:$0xff] }
  0x4f   :  { %2648 = vmatmul.mubr.msk.f32.vlgmr.msra.gmra.mrb[0].mxu0 %vm113_vm2, %v98_v12  ;;  %3477 = vmatprep.subr.bf16.mxu0 %v4140_v0  ;;  %v4328_v22 = vpack.c.bf16 %v269_v21, %v268_v20  ;;  %v271_v24 = vld [vmem:[#allocation4 + $0x68] sm:$0xff]  ;;  %v272_v26 = vld [vmem:[#allocation4 + $0x70] sm:$0xff]  ;;  %v273_v27 = vld [vmem:[#allocation4 + $0x78] sm:$0xff] }
  0x50   :  { %3479 = vmatpush3.bf16.msra.mxu0 %v4289_v5  ;;  %v4334_v25 = vpack.c.bf16 %v271_v24, %v270_v23  ;;  %v4340_v28 = vpack.c.bf16 %v273_v27, %v272_v26  ;;  %v4373_v31 = vld [vmem:[%s4924_s3] ss:$0 sm:$0xff]  ;;  %v99_v57 = vld [vmem:[%s4921_s0 + $0x10] sm:$0xff]  ;;  %v100_v58 = vld [vmem:[%s4921_s0 + $0x18] sm:$0xff] }
  0x51   :  { %3410 = vmatpush3.bf16.msra.mxu1 %v4292_v7  ;;  %3480 = vmatprep.subr.bf16.mxu0 %v4140_v0  ;;  %v101_v20 = vld [vmem:[%s4921_s0 + $0x20] sm:$0xff]  ;;  %v102_v21 = vld [vmem:[%s4921_s0 + $0x28] sm:$0xff]  ;;  %v103_v24 = vld [vmem:[%s4921_s0 + $0x30] sm:$0xff] }
  0x52   :  { %3411 = vmatprep.subr.bf16.mxu1 %v4140_v0  ;;  %2650 = vmatprep.mubr.msk.f32.mxu0 %vm113_vm2, %v99_v57  ;;  %v4445_v26 = vld [vmem:[%s4921_s0 + $0x38] sm:$0xff] }
  0x53   :  { %2651 = vmatmul.mubr.msk.f32.gmra.mrb[2].mxu0 %vm113_vm2, %v100_v58 }
  0x54   :  { %3482 = vmatpush3.bf16.msra.mxu0 %v4292_v7  ;;  %2653 = vmatprep.mubr.msk.f32.mxu0 %vm113_vm2, %v101_v20 }
  0x55   :  { %3413 = vmatpush3.bf16.msra.mxu1 %v4308_v13  ;;  %3483 = vmatprep.subr.bf16.mxu0 %v4140_v0 }
  0x56   :  { %3414 = vmatprep.subr.bf16.mxu1 %v4140_v0 }
  0x57   :  { %2654 = vmatmul.mubr.msk.f32.gmra.mrb[4].mxu0 %vm113_vm2, %v102_v21 }
  0x58   :  { %3485 = vmatpush3.bf16.msra.mxu0 %v4308_v13  ;;  %2656 = vmatprep.mubr.msk.f32.mxu0 %vm113_vm2, %v103_v24 }
  0x59   :  { %3416 = vmatpush3.bf16.msra.mxu1 %v4316_v16  ;;  %3486 = vmatprep.subr.bf16.mxu0 %v4140_v0 }
  0x5a   :  { %3417 = vmatprep.subr.bf16.mxu1 %v4140_v0 }
  0x5b   :  { %2657 = vmatmul.mubr.msk.f32.gmra.mrb[6].mxu0 %vm113_vm2, %v4445_v26 }
  0x5c   :  { %3488 = vmatpush3.bf16.msra.mxu0 %v4316_v16  ;;  %2796 = vmatprep.mubr.msk.f32.mxu0 %vm4141_vm0, %v4142_v1 }
  0x5d   :  { %3419 = vmatpush3.bf16.msra.mxu1 %v4322_v19  ;;  %3489 = vmatprep.subr.bf16.mxu0 %v4140_v0 }
  0x5e   :  { %3420 = vmatprep.subr.bf16.mxu1 %v4140_v0 }
  0x60   :  { %3491 = vmatpush3.bf16.msra.mxu0 %v4322_v19 }
  0x61   :  { %3422 = vmatpush3.bf16.msra.mxu1 %v4328_v22  ;;  %3492 = vmatprep.subr.bf16.mxu0 %v4140_v0 }
  0x62   :  { %3423 = vmatprep.subr.bf16.mxu1 %v4140_v0 }
  0x64   :  { %3494 = vmatpush3.bf16.msra.mxu0 %v4328_v22 }
  0x65   :  { %3425 = vmatpush3.bf16.msra.mxu1 %v4334_v25  ;;  %3495 = vmatprep.subr.bf16.mxu0 %v4140_v0 }
  0x66   :  { %3426 = vmatprep.subr.bf16.mxu1 %v4140_v0 }
  0x68   :  { %3497 = vmatpush3.bf16.msra.mxu0 %v4334_v25 }
  0x69   :  { %3428 = vmatpush3.bf16.msra.mxu1 %v4340_v28  ;;  %3498 = vmatprep.subr.bf16.mxu0 %v4140_v0 }
  0x6a   :  { %3429 = vmatprep.subr.bf16.mxu1 %v4140_v0 }
  0x6c   :  { %2692 = vmatmul.mubr.f32.vlgmr.msra.gmra.mrb[0].mxu1 %v4142_v1  ;;  %3500 = vmatpush3.bf16.msra.mxu0 %v4340_v28 }
  0x6d   :  { %3431 = vmatpush3.bf16.msra.mxu1 %v4289_v5  ;;  %2726 = vmatprep.mubr.msk.f32.mxu1 %vm4141_vm0, %v4142_v1 }
  0x6e   :  { %3432 = vmatprep.subr.bf16.mxu1 %v4140_v0  ;;  %3525 = vmatprep.subr.bf16.mxu0 %v4140_v0 }
  0x71   :  { %3434 = vmatpush3.bf16.msra.mxu1 %v4292_v7 }
  0x72   :  { %3435 = vmatprep.subr.bf16.mxu1 %v4140_v0 }
  0x75   :  { %3437 = vmatpush3.bf16.msra.mxu1 %v4308_v13 }
  0x76   :  { %3438 = vmatprep.subr.bf16.mxu1 %v4140_v0 }
  0x79   :  { %3440 = vmatpush3.bf16.msra.mxu1 %v4316_v16 }
  0x7a   :  { %3441 = vmatprep.subr.bf16.mxu1 %v4140_v0 }
  0x7d   :  { %3443 = vmatpush3.bf16.msra.mxu1 %v4322_v19 }
  0x7e   :  { %3444 = vmatprep.subr.bf16.mxu1 %v4140_v0 }
  0x81   :  { %3446 = vmatpush3.bf16.msra.mxu1 %v4328_v22 }
  0x82   :  { %3447 = vmatprep.subr.bf16.mxu1 %v4140_v0 }
  0x85   :  { %3449 = vmatpush3.bf16.msra.mxu1 %v4334_v25 }
  0x86   :  { %3450 = vmatprep.subr.bf16.mxu1 %v4140_v0 }
  0x89   :  { %3452 = vmatpush3.bf16.msra.mxu1 %v4340_v28 }
  0x8a   :  { %3453 = vmatprep.subr.bf16.mxu1 %v4140_v0 }
 0x122   :  { %v2649_v29 = vpop.f32.mrb[0].mxu0 }
 0x123   :  { %v208_v30 = vpop.f32.mrb[1].mxu0  ;;  %v214_v49 = vadd.f32 %v2649_v29, %v4373_v31 }
 0x124   :  { %v209_v32 = vadd.f32 %v4373_v31, %v208_v30 }
 0x126   :  { %v2652_v8 = vpop.f32.mrb[2].mxu0 }
 0x127   :  { %v218_v9 = vpop.f32.mrb[3].mxu0 }
 0x128   :  { %v219_v10 = vadd.f32 %v4373_v31, %v218_v9 }
 0x13f   :  { %v387_v33 = vpop.f32.mrb[0].mxu1 }
 0x140   :  { %v391_v34 = vadd.f32 %v387_v33, %v209_v32  ;;  %v2693_v35 = vpop.f32.mrb[1].mxu1 }
 0x142   :  { %v2253_v36 = vmul.f32 -1.442695, %v391_v34 }
 0x144   :  { %3932 = vpow2.f32 %v2253_v36 }
 0x14e   :  { %v3933_v37 = vpop.eup %3932 }
 0x14f   :  { %v395_v38 = vadd.f32 1.0, %v3933_v37 }
 0x151   :  { %3934 = vrcp.f32 %v395_v38  ;;  %v4470_v38 = vpop.f32.mrb[4].mxu0 }
 0x15b   :  { %v3935_v39 = vpop.eup %3934 }
 0x15c   :  { %405 = vrot.lane.b32.xlu1 %v3935_v39, %s4143_s2  ;;  %398 = vrot.lane.b32.xlu0 %v3935_v39, %s4144_s24  ;;  %v228_v39 = vpop.f32.mrb[5].mxu0 }
 0x160   :  { %400 = vrot.lane.b32.xlu0 %v391_v34, %s4145_s26 }
 0x1ce   :  { %v399_v40 = vpop.permute.xlu0 %398  ;;  %v406_v46 = vpop.permute.xlu1 %405 }
 0x1d2   :  { %v401_v41 = vpop.permute.xlu0 %400 }
 0x1d3   :  { %v402_v42 = vmul.f32 %v401_v41, %v399_v40  ;;  %v4472_v40 = vpop.f32.mrb[6].mxu0 }
 0x1d4   :  { %v4474_v41 = vpop.f32.mrb[7].mxu0 }
 0x1d5   :  { %v403_v43 = vadd.f32 %v402_v42, %v391_v34  ;;  %v224_v42 = vadd.f32 %v2652_v8, %v4373_v31 }
 0x1d7   :  { %3936 = vtanh.f32 %v403_v43 }
 0x1e1   :  { %v3937_v44 = vpop.eup %3936 }
 0x1e2   :  { %v407_v45 = vsub.f32 0.0, %v3937_v44 }
 0x1e4   :  { %v408_v47 = vmul.f32 %v407_v45, %v406_v46 }
 0x1e6   :  { %v409_v48 = vadd.f32 %v3937_v44, %v408_v47 }
 0x1e8   :  { %2727 = vmatmul.mubr.f32.vlgmr.msra.gmra.mrb[2].mxu1 %v409_v48 }
 0x1e9   :  { %3455 = vmatpush3.bf16.msra.mxu1 %v4289_v5  ;;  %2761 = vmatprep.mubr.msk.f32.mxu1 %vm4141_vm0, %v4142_v1 }
 0x1ea   :  { %3456 = vmatprep.subr.bf16.mxu1 %v4140_v0 }
 0x1ed   :  { %3458 = vmatpush3.bf16.msra.mxu1 %v4292_v7 }
 0x1ee   :  { %3459 = vmatprep.subr.bf16.mxu1 %v4140_v0 }
 0x1f1   :  { %3461 = vmatpush3.bf16.msra.mxu1 %v4308_v13 }
 0x1f2   :  { %3462 = vmatprep.subr.bf16.mxu1 %v4140_v0 }
 0x1f5   :  { %3464 = vmatpush3.bf16.msra.mxu1 %v4316_v16 }
 0x1f6   :  { %3465 = vmatprep.subr.bf16.mxu1 %v4140_v0 }
 0x1f9   :  { %3467 = vmatpush3.bf16.msra.mxu1 %v4322_v19 }
 0x1fa   :  { %3468 = vmatprep.subr.bf16.mxu1 %v4140_v0 }
 0x1fd   :  { %3470 = vmatpush3.bf16.msra.mxu1 %v4328_v22 }
 0x1fe   :  { %3471 = vmatprep.subr.bf16.mxu1 %v4140_v0 }
 0x201   :  { %3473 = vmatpush3.bf16.msra.mxu1 %v4334_v25 }
 0x202   :  { %3474 = vmatprep.subr.bf16.mxu1 %v4140_v0 }
 0x205   :  { %3476 = vmatpush3.bf16.msra.mxu1 %v4340_v28 }
 0x206   :  { %3501 = vmatprep.subr.bf16.mxu1 %v4140_v0 }
 0x2bb   :  { %v477_v50 = vpop.f32.mrb[2].mxu1 }
 0x2bc   :  { %v481_v51 = vadd.f32 %v477_v50, %v214_v49  ;;  %v2728_v52 = vpop.f32.mrb[3].mxu1 }
 0x2be   :  { %v2254_v53 = vmul.f32 -1.442695, %v481_v51  ;;  %490 = vrot.lane.b32.xlu0 %v481_v51, %s4145_s26 }
 0x2c0   :  { %3938 = vpow2.f32 %v2254_v53 }
 0x2ca   :  { %v3939_v54 = vpop.eup %3938 }
 0x2cb   :  { %v485_v55 = vadd.f32 1.0, %v3939_v54 }
 0x2cd   :  { %3940 = vrcp.f32 %v485_v55 }
 0x2d7   :  { %v3941_v56 = vpop.eup %3940 }
 0x2d8   :  { %488 = vrot.lane.b32.xlu1 %v3941_v56, %s4144_s24 }
 0x2dc   :  { %495 = vrot.lane.b32.xlu1 %v3941_v56, %s4143_s2 }
 0x330   :  { %v491_v59 = vpop.permute.xlu0 %490 }
 0x34a   :  { %v489_v60 = vpop.permute.xlu1 %488 }
 0x34b   :  { %v492_v61 = vmul.f32 %v491_v59, %v489_v60  ;;  %v229_v59 = vadd.f32 %v4373_v31, %v228_v39 }
 0x34d   :  { %v493_v62 = vadd.f32 %v492_v61, %v481_v51 }
 0x34e   :  { %v496_v3 = vpop.permute.xlu1 %495 }
 0x34f   :  { %3942 = vtanh.f32 %v493_v62 }
 0x359   :  { %v3943_v63 = vpop.eup %3942 }
 0x35a   :  { %v497_v2 = vsub.f32 %v409_v48, %v3943_v63 }
 0x35c   :  { %v498_v4 = vmul.f32 %v497_v2, %v496_v3 }
 0x35e   :  { %v499_v6 = vadd.f32 %v3943_v63, %v498_v4 }
 0x360   :  { %2762 = vmatmul.mubr.f32.vlgmr.msra.gmra.mrb[4].mxu1 %v499_v6 }
 0x361   :  { %3503 = vmatpush3.bf16.msra.mxu1 %v4289_v5  ;;  %2831 = vmatprep.mubr.msk.f32.mxu1 %vm4141_vm0, %v4142_v1 }
 0x362   :  { %3504 = vmatprep.subr.bf16.mxu1 %v4140_v0 }
 0x365   :  { %3506 = vmatpush3.bf16.msra.mxu1 %v4292_v7 }
 0x366   :  { %3507 = vmatprep.subr.bf16.mxu1 %v4140_v0 }
 0x369   :  { %3509 = vmatpush3.bf16.msra.mxu1 %v4308_v13 }
 0x36a   :  { %3510 = vmatprep.subr.bf16.mxu1 %v4140_v0 }
 0x36d   :  { %3512 = vmatpush3.bf16.msra.mxu1 %v4316_v16 }
 0x36e   :  { %3513 = vmatprep.subr.bf16.mxu1 %v4140_v0 }
 0x371   :  { %3515 = vmatpush3.bf16.msra.mxu1 %v4322_v19 }
 0x372   :  { %3516 = vmatprep.subr.bf16.mxu1 %v4140_v0 }
 0x375   :  { %3518 = vmatpush3.bf16.msra.mxu1 %v4328_v22 }
 0x376   :  { %3519 = vmatprep.subr.bf16.mxu1 %v4140_v0 }
 0x379   :  { %3521 = vmatpush3.bf16.msra.mxu1 %v4334_v25 }
 0x37a   :  { %3522 = vmatprep.subr.bf16.mxu1 %v4140_v0 }
 0x37d   :  { %3524 = vmatpush3.bf16.msra.mxu1 %v4340_v28 }
 0x37e   :  { %3549 = vmatprep.subr.bf16.mxu1 %v4140_v0 }
 0x433   :  { %v567_v11 = vpop.f32.mrb[4].mxu1 }
 0x434   :  { %v571_v12 = vadd.f32 %v567_v11, %v219_v10  ;;  %v2763_v14 = vpop.f32.mrb[5].mxu1 }
 0x436   :  { %v2255_v15 = vmul.f32 -1.442695, %v571_v12  ;;  %580 = vrot.lane.b32.xlu1 %v571_v12, %s4145_s26 }
 0x438   :  { %3944 = vpow2.f32 %v2255_v15 }
 0x442   :  { %v3945_v17 = vpop.eup %3944 }
 0x443   :  { %v575_v18 = vadd.f32 1.0, %v3945_v17 }
 0x445   :  { %3946 = vrcp.f32 %v575_v18 }
 0x44f   :  { %v3947_v23 = vpop.eup %3946 }
 0x450   :  { %578 = vrot.lane.b32.xlu0 %v3947_v23, %s4144_s24 }
 0x454   :  { %585 = vrot.lane.b32.xlu0 %v3947_v23, %s4143_s2 }
 0x4a8   :  { %v581_v27 = vpop.permute.xlu1 %580 }
 0x4c2   :  { %v579_v29 = vpop.permute.xlu0 %578 }
 0x4c3   :  { %v582_v30 = vmul.f32 %v581_v27, %v579_v29 }
 0x4c5   :  { %v583_v32 = vadd.f32 %v582_v30, %v571_v12 }
 0x4c6   :  { %v586_v35 = vpop.permute.xlu0 %585 }
 0x4c7   :  { %3948 = vtanh.f32 %v583_v32 }
 0x4d1   :  { %v3949_v33 = vpop.eup %3948 }
 0x4d2   :  { %v587_v34 = vsub.f32 %v499_v6, %v3949_v33 }
 0x4d4   :  { %v588_v36 = vmul.f32 %v587_v34, %v586_v35 }
 0x4d6   :  { %v589_v37 = vadd.f32 %v3949_v33, %v588_v36  ;;  %v239_v33 = vadd.f32 %v4373_v31, %v4474_v41 }
 0x4d8   :  { %2797 = vmatmul.mubr.f32.vlgmr.msra.gmra.mrb[8].mxu0 %v589_v37 }
 0x4d9   :  { %3527 = vmatpush3.bf16.msra.mxu0 %v4289_v5  ;;  %2866 = vmatprep.mubr.msk.f32.mxu0 %vm4141_vm0, %v4142_v1 }
 0x4da   :  { %3528 = vmatprep.subr.bf16.mxu0 %v4140_v0 }
 0x4dd   :  { %3530 = vmatpush3.bf16.msra.mxu0 %v4292_v7 }
 0x4de   :  { %3531 = vmatprep.subr.bf16.mxu0 %v4140_v0 }
 0x4e1   :  { %3533 = vmatpush3.bf16.msra.mxu0 %v4308_v13 }
 0x4e2   :  { %3534 = vmatprep.subr.bf16.mxu0 %v4140_v0 }
 0x4e5   :  { %3536 = vmatpush3.bf16.msra.mxu0 %v4316_v16 }
 0x4e6   :  { %3537 = vmatprep.subr.bf16.mxu0 %v4140_v0 }
 0x4e9   :  { %3539 = vmatpush3.bf16.msra.mxu0 %v4322_v19 }
 0x4ea   :  { %3540 = vmatprep.subr.bf16.mxu0 %v4140_v0 }
 0x4ed   :  { %3542 = vmatpush3.bf16.msra.mxu0 %v4328_v22 }
 0x4ee   :  { %3543 = vmatprep.subr.bf16.mxu0 %v4140_v0 }
 0x4f1   :  { %3545 = vmatpush3.bf16.msra.mxu0 %v4334_v25 }
 0x4f2   :  { %3546 = vmatprep.subr.bf16.mxu0 %v4140_v0 }
 0x4f5   :  { %3548 = vmatpush3.bf16.msra.mxu0 %v4340_v28 }
 0x4f6   :  { %3573 = vmatprep.subr.bf16.mxu0 %v4140_v0 }
 0x5ab   :  { %v657_v43 = vpop.f32.mrb[8].mxu0 }
 0x5ac   :  { %v661_v44 = vadd.f32 %v657_v43, %v224_v42  ;;  %v2798_v45 = vpop.f32.mrb[9].mxu0 }
 0x5ae   :  { %v2256_v46 = vmul.f32 -1.442695, %v661_v44  ;;  %670 = vrot.lane.b32.xlu0 %v661_v44, %s4145_s26 }
 0x5b0   :  { %3950 = vpow2.f32 %v2256_v46 }
 0x5ba   :  { %v3951_v47 = vpop.eup %3950 }
 0x5bb   :  { %v665_v48 = vadd.f32 1.0, %v3951_v47 }
 0x5bd   :  { %3952 = vrcp.f32 %v665_v48 }
 0x5c7   :  { %v3953_v49 = vpop.eup %3952 }
 0x5c8   :  { %668 = vrot.lane.b32.xlu1 %v3953_v49, %s4144_s24 }
 0x5cc   :  { %675 = vrot.lane.b32.xlu1 %v3953_v49, %s4143_s2 }
 0x620   :  { %v671_v50 = vpop.permute.xlu0 %670 }
 0x63a   :  { %v669_v51 = vpop.permute.xlu1 %668 }
 0x63b   :  { %v672_v52 = vmul.f32 %v671_v50, %v669_v51  ;;  %v274_v51 = vld [vmem:[#allocation7] sm:$0xff] }
 0x63d   :  { %v673_v53 = vadd.f32 %v672_v52, %v661_v44  ;;  %v275_v52 = vld [vmem:[#allocation7 + $0x8] sm:$0xff] }
 0x63e   :  { %v676_v56 = vpop.permute.xlu1 %675 }
 0x63f   :  { %3954 = vtanh.f32 %v673_v53  ;;  %v276_v53 = vld [vmem:[#allocation7 + $0x10] sm:$0xff] }
 0x649   :  { %v3955_v54 = vpop.eup %3954 }
 0x64a   :  { %v677_v55 = vsub.f32 %v589_v37, %v3955_v54 }
 0x64c   :  { %v678_v57 = vmul.f32 %v677_v55, %v676_v56  ;;  %v277_v55 = vld [vmem:[#allocation7 + $0x18] sm:$0xff] }
 0x64d   :  { %v4540_v56 = vpack.c.bf16 %v277_v55, %v276_v53 }
 0x64e   :  { %v679_v58 = vadd.f32 %v3955_v54, %v678_v57  ;;  %v4537_v54 = vpack.c.bf16 %v275_v52, %v274_v51  ;;  %v278_v57 = vld [vmem:[#allocation7 + $0x20] sm:$0xff]  ;;  %v296_v51 = vld [vmem:[#allocation9 + $0x30] sm:$0xff]  ;;  %v297_v52 = vld [vmem:[#allocation9 + $0x38] sm:$0xff] }
 0x64f   :  { %v4616_v55 = vpack.c.bf16 %v297_v52, %v296_v51 }
 0x650   :  { %2832 = vmatmul.mubr.f32.vlgmr.msra.gmra.mrb[6].mxu1 %v679_v58 }
 0x651   :  { %3551 = vmatpush3.bf16.msra.mxu1 %v4289_v5  ;;  %2901 = vmatprep.mubr.msk.f32.mxu1 %vm4141_vm0, %v4142_v1 }
 0x652   :  { %3552 = vmatprep.subr.bf16.mxu1 %v4140_v0 }
 0x655   :  { %3554 = vmatpush3.bf16.msra.mxu1 %v4292_v7 }
 0x656   :  { %3555 = vmatprep.subr.bf16.mxu1 %v4140_v0 }
 0x659   :  { %3557 = vmatpush3.bf16.msra.mxu1 %v4308_v13 }
 0x65a   :  { %3558 = vmatprep.subr.bf16.mxu1 %v4140_v0 }
 0x65d   :  { %3560 = vmatpush3.bf16.msra.mxu1 %v4316_v16 }
 0x65e   :  { %3561 = vmatprep.subr.bf16.mxu1 %v4140_v0 }
 0x661   :  { %3563 = vmatpush3.bf16.msra.mxu1 %v4322_v19 }
 0x662   :  { %3564 = vmatprep.subr.bf16.mxu1 %v4140_v0 }
 0x665   :  { %3566 = vmatpush3.bf16.msra.mxu1 %v4328_v22 }
 0x666   :  { %3567 = vmatprep.subr.bf16.mxu1 %v4140_v0 }
 0x669   :  { %3569 = vmatpush3.bf16.msra.mxu1 %v4334_v25 }
 0x66a   :  { %3570 = vmatprep.subr.bf16.mxu1 %v4140_v0 }
 0x66d   :  { %3572 = vmatpush3.bf16.msra.mxu1 %v4340_v28 }
 0x66e   :  { %3597 = vmatprep.subr.bf16.mxu1 %v4140_v0 }
 0x723   :  { %v747_v60 = vpop.f32.mrb[6].mxu1 }
 0x724   :  { %v751_v61 = vadd.f32 %v747_v60, %v229_v59  ;;  %v2833_v62 = vpop.f32.mrb[7].mxu1  ;;  %v244_v60 = vadd.f32 %v4472_v40, %v4373_v31  ;;  %v283_v40 = vld [vmem:[#allocation7 + $0x48] sm:$0xff] }
 0x726   :  { %v2257_v63 = vmul.f32 -1.442695, %v751_v61  ;;  %760 = vrot.lane.b32.xlu1 %v751_v61, %s4145_s26 }
 0x728   :  { %3956 = vpow2.f32 %v2257_v63 }
 0x732   :  { %v3957_v2 = vpop.eup %3956 }
 0x733   :  { %v755_v3 = vadd.f32 1.0, %v3957_v2 }
 0x735   :  { %3958 = vrcp.f32 %v755_v3 }
 0x73f   :  { %v3959_v4 = vpop.eup %3958 }
 0x740   :  { %758 = vrot.lane.b32.xlu0 %v3959_v4, %s4144_s24 }
 0x744   :  { %765 = vrot.lane.b32.xlu0 %v3959_v4, %s4143_s2  ;;  %v280_v4 = vld [vmem:[#allocation7 + $0x30] sm:$0xff] }
 0x798   :  { %v761_v6 = vpop.permute.xlu1 %760 }
 0x7b2   :  { %v759_v8 = vpop.permute.xlu0 %758 }
 0x7b3   :  { %v762_v9 = vmul.f32 %v761_v6, %v759_v8  ;;  %v281_v6 = vld [vmem:[#allocation7 + $0x38] sm:$0xff] }
 0x7b5   :  { %v763_v10 = vadd.f32 %v762_v9, %v751_v61  ;;  %v4552_v9 = vpack.c.bf16 %v281_v6, %v280_v4 }
 0x7b6   :  { %v766_v14 = vpop.permute.xlu0 %765 }
 0x7b7   :  { %3960 = vtanh.f32 %v763_v10 }
 0x7c1   :  { %v3961_v11 = vpop.eup %3960 }
 0x7c2   :  { %v767_v12 = vsub.f32 %v679_v58, %v3961_v11  ;;  %v279_v58 = vld [vmem:[#allocation7 + $0x28] sm:$0xff] }
 0x7c3   :  { %v4544_v59 = vpack.c.bf16 %v279_v58, %v278_v57  ;;  %v298_v57 = vld [vmem:[#allocation9 + $0x40] sm:$0xff]  ;;  %v299_v58 = vld [vmem:[#allocation9 + $0x48] sm:$0xff] }
 0x7c4   :  { %v768_v15 = vmul.f32 %v767_v12, %v766_v14  ;;  %v285_v12 = vld [vmem:[#allocation7 + $0x58] sm:$0xff] }
 0x7c6   :  { %v769_v17 = vadd.f32 %v3961_v11, %v768_v15  ;;  %v284_v11 = vld [vmem:[#allocation7 + $0x50] sm:$0xff]  ;;  %v286_v15 = vld [vmem:[#allocation7 + $0x60] sm:$0xff] }
 0x7c7   :  { %v4560_v14 = vpack.c.bf16 %v285_v12, %v284_v11 }
 0x7c8   :  { %2867 = vmatmul.mubr.f32.vlgmr.msra.gmra.mrb[10].mxu0 %v769_v17 }
 0x7c9   :  { %3575 = vmatpush3.bf16.msra.mxu0 %v4289_v5  ;;  %2936 = vmatprep.mubr.msk.f32.mxu0 %vm4141_vm0, %v4142_v1  ;;  %v234_v5 = vadd.f32 %v4470_v38, %v4373_v31  ;;  %v282_v31 = vld [vmem:[#allocation7 + $0x40] sm:$0xff] }
 0x7ca   :  { %3576 = vmatprep.subr.bf16.mxu0 %v4140_v0  ;;  %v4556_v10 = vpack.c.bf16 %v283_v40, %v282_v31  ;;  %v305_v31 = vld [vmem:[#allocation9 + $0x78] sm:$0xff] }
 0x7cd   :  { %3578 = vmatpush3.bf16.msra.mxu0 %v4292_v7 }
 0x7ce   :  { %3579 = vmatprep.subr.bf16.mxu0 %v4140_v0 }
 0x7d1   :  { %3581 = vmatpush3.bf16.msra.mxu0 %v4308_v13 }
 0x7d2   :  { %3582 = vmatprep.subr.bf16.mxu0 %v4140_v0 }
 0x7d5   :  { %3584 = vmatpush3.bf16.msra.mxu0 %v4316_v16 }
 0x7d6   :  { %3585 = vmatprep.subr.bf16.mxu0 %v4140_v0 }
 0x7d9   :  { %3587 = vmatpush3.bf16.msra.mxu0 %v4322_v19 }
 0x7da   :  { %3588 = vmatprep.subr.bf16.mxu0 %v4140_v0 }
 0x7dd   :  { %3590 = vmatpush3.bf16.msra.mxu0 %v4328_v22 }
 0x7de   :  { %3591 = vmatprep.subr.bf16.mxu0 %v4140_v0 }
 0x7e1   :  { %3593 = vmatpush3.bf16.msra.mxu0 %v4334_v25 }
 0x7e2   :  { %3594 = vmatprep.subr.bf16.mxu0 %v4140_v0 }
 0x7e5   :  { %3596 = vmatpush3.bf16.msra.mxu0 %v4340_v28 }
 0x7e6   :  { %2939 = vmatprep.subr.mxu0 %v4142_v1 }
 0x89b   :  { %v837_v7 = vpop.f32.mrb[10].mxu0 }
 0x89c   :  { %v841_v13 = vadd.f32 %v837_v7, %v234_v5  ;;  %v2868_v16 = vpop.f32.mrb[11].mxu0 }
 0x89d   :  { %v289_v16 = vld [vmem:[#allocation7 + $0x78] sm:$0xff] }
 0x89e   :  { %v2258_v19 = vmul.f32 -1.442695, %v841_v13  ;;  %850 = vrot.lane.b32.xlu0 %v841_v13, %s4145_s26 }
 0x8a0   :  { %3962 = vpow2.f32 %v2258_v19  ;;  %v1041_v19 = vld [vmem:[%s4925_s4] sm:$0xf] }
 0x8aa   :  { %v3963_v22 = vpop.eup %3962 }
 0x8ab   :  { %v845_v18 = vadd.f32 1.0, %v3963_v22 }
 0x8ad   :  { %3964 = vrcp.f32 %v845_v18 }
 0x8b7   :  { %v3965_v25 = vpop.eup %3964 }
 0x8b8   :  { %848 = vrot.lane.b32.xlu1 %v3965_v25, %s4144_s24 }
 0x8bc   :  { %855 = vrot.lane.b32.xlu1 %v3965_v25, %s4143_s2 }
 0x910   :  { %v851_v28 = vpop.permute.xlu0 %850 }
 0x92a   :  { %v849_v20 = vpop.permute.xlu1 %848 }
 0x92b   :  { %v852_v21 = vmul.f32 %v851_v28, %v849_v20 }
 0x92d   :  { %v853_v23 = vadd.f32 %v852_v21, %v841_v13  ;;  %v288_v13 = vld [vmem:[#allocation7 + $0x70] sm:$0xff]  ;;  %v255_v21 = vlaneseq }
 0x92e   :  { %v856_v29 = vpop.permute.xlu1 %855  ;;  %v4572_v22 = vpack.c.bf16 %v289_v16, %v288_v13 }
 0x92f   :  { %3966 = vtanh.f32 %v853_v23 }
 0x939   :  { %v3967_v24 = vpop.eup %3966 }
 0x93a   :  { %v857_v27 = vsub.f32 %v769_v17, %v3967_v24  ;;  %v287_v17 = vld [vmem:[#allocation7 + $0x68] sm:$0xff] }
 0x93b   :  { %v4564_v7 = vpack.c.bf16 %v287_v17, %v286_v15 }
 0x93c   :  { %v858_v30 = vmul.f32 %v857_v27, %v856_v29 }
 0x93e   :  { %v859_v32 = vadd.f32 %v3967_v24, %v858_v30  ;;  %v4583_v24 = vand.u32 127, %v255_v21 }
 0x940   :  { %2902 = vmatmul.mubr.f32.vlgmr.msra.gmra.mrb[8].mxu1 %v859_v32  ;;  %vm257_vm3 = vcmp.lt.s32.totalorder %v4583_v24, 96 }
 0x941   :  { %2976 = vmatprep.mubr.msk.f32.mxu1 %vm4141_vm0, %v4142_v1  ;;  %3599 = vmatpush3.bf16.msra.mxu1 %v4537_v54 }
 0x942   :  { %3600 = vmatprep.subr.bf16.mxu1 %v4140_v0 }
 0x945   :  { %3602 = vmatpush3.bf16.msra.mxu1 %v4540_v56 }
 0x946   :  { %3603 = vmatprep.subr.bf16.mxu1 %v4140_v0 }
 0x949   :  { %3605 = vmatpush3.bf16.msra.mxu1 %v4544_v59 }
 0x94a   :  { %3606 = vmatprep.subr.bf16.mxu1 %v4140_v0 }
 0x94d   :  { %3608 = vmatpush3.bf16.msra.mxu1 %v4552_v9 }
 0x94e   :  { %3609 = vmatprep.subr.bf16.mxu1 %v4140_v0 }
 0x951   :  { %3611 = vmatpush3.bf16.msra.mxu1 %v4556_v10 }
 0x952   :  { %3612 = vmatprep.subr.bf16.mxu1 %v4140_v0 }
 0x955   :  { %3614 = vmatpush3.bf16.msra.mxu1 %v4560_v14 }
 0x956   :  { %3615 = vmatprep.subr.bf16.mxu1 %v4140_v0 }
 0x959   :  { %3617 = vmatpush3.bf16.msra.mxu1 %v4564_v7 }
 0x95a   :  { %3618 = vmatprep.subr.bf16.mxu1 %v4140_v0 }
 0x95d   :  { %3620 = vmatpush3.bf16.msra.mxu1 %v4572_v22 }
 0x95e   :  { %3669 = vmatprep.subr.bf16.mxu1 %v4140_v0 }
 0xa13   :  { %v927_v34 = vpop.f32.mrb[8].mxu1 }
 0xa14   :  { %v931_v35 = vadd.f32 %v927_v34, %v239_v33  ;;  %v2903_v36 = vpop.f32.mrb[9].mxu1  ;;  %v290_v34 = vld [vmem:[#allocation9] sm:$0xff] }
 0xa15   :  { %v292_v36 = vld [vmem:[#allocation9 + $0x10] sm:$0xff] }
 0xa16   :  { %v2259_v37 = vmul.f32 -1.442695, %v931_v35  ;;  %940 = vrot.lane.b32.xlu1 %v931_v35, %s4145_s26 }
 0xa18   :  { %3968 = vpow2.f32 %v2259_v37 }
 0xa22   :  { %v3969_v38 = vpop.eup %3968 }
 0xa23   :  { %v935_v39 = vadd.f32 1.0, %v3969_v38  ;;  %v293_v38 = vld [vmem:[#allocation9 + $0x18] sm:$0xff] }
 0xa25   :  { %3970 = vrcp.f32 %v935_v39  ;;  %v4597_v39 = vpack.c.bf16 %v293_v38, %v292_v36 }
 0xa2f   :  { %v3971_v42 = vpop.eup %3970 }
 0xa30   :  { %938 = vrot.lane.b32.xlu0 %v3971_v42, %s4144_s24 }
 0xa34   :  { %945 = vrot.lane.b32.xlu0 %v3971_v42, %s4143_s2  ;;  %v294_v42 = vld [vmem:[#allocation9 + $0x20] sm:$0xff] }
 0xa88   :  { %v941_v43 = vpop.permute.xlu1 %940 }
 0xaa2   :  { %v939_v44 = vpop.permute.xlu0 %938 }
 0xaa3   :  { %v942_v45 = vmul.f32 %v941_v43, %v939_v44  ;;  %v295_v43 = vld [vmem:[#allocation9 + $0x28] sm:$0xff]  ;;  %v2261_v44 = vld [vmem:[%s4926_s5] ss:$0 sm:$0xff] }
 0xaa5   :  { %v943_v46 = vadd.f32 %v942_v45, %v931_v35  ;;  %v291_v35 = vld [vmem:[#allocation9 + $0x8] sm:$0xff]  ;;  %v4606_v45 = vpack.c.bf16 %v295_v43, %v294_v42 }
 0xaa6   :  { %v946_v48 = vpop.permute.xlu0 %945  ;;  %v4594_v37 = vpack.c.bf16 %v291_v35, %v290_v34 }
 0xaa7   :  { %3972 = vtanh.f32 %v943_v46 }
 0xab1   :  { %v3973_v41 = vpop.eup %3972 }
 0xab2   :  { %v947_v47 = vsub.f32 %v859_v32, %v3973_v41 }
 0xab4   :  { %v948_v49 = vmul.f32 %v947_v47, %v946_v48 }
 0xab6   :  { %v4532_v50 = vadd.f32 %v3973_v41, %v948_v49 }
 0xab8   :  { %2937 = vmatmul.mubr.f32.vlgmr.msra.gmra.mrb[12].mxu0 %v4532_v50 }
 0xab9   :  { %2941 = vmatprep.mubr.msk.f32.mxu0 %vm4141_vm0, %v4142_v1  ;;  %2940 = vmatpush3.msk.msra.mxu0 %vm138_vm1, %v1041_v19 }
 0xaba   :  { %3621 = vmatprep.subr.bf16.mxu0 %v4140_v0 }
 0xabc   :  { %2942 = vmatmul.mubr.msk.f32.vlgmr.msra.gmra.mrb[14].mxu0 %vm113_vm2, %v4445_v26 }
 0xabd   :  { %3011 = vmatprep.mubr.msk.f32.mxu0 %vm4141_vm0, %v4142_v1  ;;  %3623 = vmatpush3.bf16.msra.mxu0 %v4594_v37 }
 0xabe   :  { %3624 = vmatprep.subr.bf16.mxu0 %v4140_v0 }
 0xac1   :  { %3626 = vmatpush3.bf16.msra.mxu0 %v4597_v39 }
 0xac2   :  { %3627 = vmatprep.subr.bf16.mxu0 %v4140_v0 }
 0xac5   :  { %3629 = vmatpush3.bf16.msra.mxu0 %v4606_v45 }
 0xac6   :  { %3630 = vmatprep.subr.bf16.mxu0 %v4140_v0 }
 0xac9   :  { %3632 = vmatpush3.bf16.msra.mxu0 %v4616_v55 }
 0xaca   :  { %3633 = vmatprep.subr.bf16.mxu0 %v4140_v0 }
 0xb8b   :  { %v1017_v61 = vpop.f32.mrb[12].mxu0 }
 0xb8c   :  { %v1021_v62 = vadd.f32 %v1017_v61, %v244_v60  ;;  %v2938_v63 = vpop.f32.mrb[13].mxu0  ;;  %v4622_v60 = vpack.c.bf16 %v299_v58, %v298_v57  ;;  %v300_v61 = vld [vmem:[#allocation9 + $0x50] sm:$0xff] }
 0xb8e   :  { %v2260_v2 = vmul.f32 -1.442695, %v1021_v62  ;;  %1030 = vrot.lane.b32.xlu0 %v1021_v62, %s4145_s26  ;;  %3635 = vmatpush3.bf16.msra.mxu0 %v4622_v60 }
 0xb8f   :  { %v1121_v32 = vpop.f32.mrb[14].mxu0  ;;  %3636 = vmatprep.subr.bf16.mxu0 %v4140_v0 }
 0xb90   :  { %3974 = vpow2.f32 %v2260_v2  ;;  %v2943_v33 = vpop.f32.mrb[15].mxu0  ;;  %v1122_v46 = vadd.f32 %v2261_v44, %v1121_v32  ;;  %v302_v2 = vld [vmem:[#allocation9 + $0x60] sm:$0xff] }
 0xb9a   :  { %v3975_v3 = vpop.eup %3974 }
 0xb9b   :  { %v1025_v8 = vadd.f32 1.0, %v3975_v3  ;;  %v303_v3 = vld [vmem:[#allocation9 + $0x68] sm:$0xff] }
 0xb9c   :  { %v4634_v6 = vpack.c.bf16 %v303_v3, %v302_v2 }
 0xb9d   :  { %3976 = vrcp.f32 %v1025_v8  ;;  %v304_v8 = vld [vmem:[#allocation9 + $0x70] sm:$0xff] }
 0xb9e   :  { %v4641_v40 = vpack.c.bf16 %v305_v31, %v304_v8 }
 0xba7   :  { %v3977_v5 = vpop.eup %3976 }
 0xba8   :  { %1028 = vrot.lane.b32.xlu1 %v3977_v5, %s4144_s24 }
 0xbac   :  { %1035 = vrot.lane.b32.xlu1 %v3977_v5, %s4143_s2 }
 0xc00   :  { %v1031_v18 = vpop.permute.xlu0 %1030 }
 0xc1a   :  { %v1029_v25 = vpop.permute.xlu1 %1028 }
 0xc1b   :  { %v1032_v28 = vmul.f32 %v1031_v18, %v1029_v25  ;;  %v4673_v25 = vld [vmem:[%s4930_s9] ss:$0 sm:$0xff] }
 0xc1d   :  { %v1033_v20 = vadd.f32 %v1032_v28, %v1021_v62  ;;  %v301_v62 = vld [vmem:[#allocation9 + $0x58] sm:$0xff] }
 0xc1e   :  { %v1036_v27 = vpop.permute.xlu1 %1035  ;;  %v4628_v63 = vpack.c.bf16 %v301_v62, %v300_v61 }
 0xc1f   :  { %3978 = vtanh.f32 %v1033_v20 }
 0xc20   :  { %3638 = vmatpush3.bf16.msra.mxu0 %v4628_v63 }
 0xc21   :  { %3639 = vmatprep.subr.bf16.mxu0 %v4140_v0 }
 0xc24   :  { %3641 = vmatpush3.bf16.msra.mxu0 %v4634_v6 }
 0xc25   :  { %3642 = vmatprep.subr.bf16.mxu0 %v4140_v0 }
 0xc28   :  { %3644 = vmatpush3.bf16.msra.mxu0 %v4641_v40 }
 0xc29   :  { %v3979_v23 = vpop.eup %3978  ;;  %3645 = vmatprep.subr.bf16.mxu0 %v4140_v0 }
 0xc2a   :  { %v1037_v26 = vsub.f32 %v4532_v50, %v3979_v23 }
 0xc2c   :  { %v1038_v29 = vmul.f32 %v1037_v26, %v1036_v27  ;;  %v4705_v27 = vld [vmem:[%s4928_s7] ss:$0 sm:$0xff] }
 0xc2e   :  { %v4587_v30 = vadd.f32 %v3979_v23, %v1038_v29 }
 0xc30   :  { %2977 = vmatmul.mubr.msk.f32.vlgmr.msra.gmra.mrb[10].mxu1 %vm257_vm3, %v4587_v30 }
 0xc31   :  { %3081 = vmatprep.mubr.msk.f32.mxu1 %vm4141_vm0, %v4142_v1  ;;  %3671 = vmatpush3.bf16.msra.mxu1 %v4594_v37 }
 0xc32   :  { %3672 = vmatprep.subr.bf16.mxu1 %v4140_v0 }
 0xc35   :  { %3674 = vmatpush3.bf16.msra.mxu1 %v4597_v39 }
 0xc36   :  { %3675 = vmatprep.subr.bf16.mxu1 %v4140_v0 }
 0xc39   :  { %3677 = vmatpush3.bf16.msra.mxu1 %v4606_v45 }
 0xc3a   :  { %3678 = vmatprep.subr.bf16.mxu1 %v4140_v0 }
 0xc3d   :  { %3680 = vmatpush3.bf16.msra.mxu1 %v4616_v55 }
 0xc3e   :  { %3681 = vmatprep.subr.bf16.mxu1 %v4140_v0 }
 0xc41   :  { %3683 = vmatpush3.bf16.msra.mxu1 %v4622_v60 }
 0xc42   :  { %3684 = vmatprep.subr.bf16.mxu1 %v4140_v0 }
 0xc45   :  { %3686 = vmatpush3.bf16.msra.mxu1 %v4628_v63 }
 0xc46   :  { %3687 = vmatprep.subr.bf16.mxu1 %v4140_v0 }
 0xc49   :  { %3689 = vmatpush3.bf16.msra.mxu1 %v4634_v6 }
 0xc4a   :  { %3690 = vmatprep.subr.bf16.mxu1 %v4140_v0 }
 0xc4d   :  { %3692 = vmatpush3.bf16.msra.mxu1 %v4641_v40 }
 0xc4e   :  { %3717 = vmatprep.subr.bf16.mxu1 %v4140_v0 }
 0xd03   :  { %v1192_v41 = vpop.f32.mrb[10].mxu1 }
 0xd04   :  { %v1196_v47 = vadd.f32 %v1192_v41, %v1122_v46  ;;  %v2978_v48 = vpop.f32.mrb[11].mxu1 }
 0xd06   :  { %v2265_v49 = vmul.f32 -1.442695, %v1196_v47  ;;  %1205 = vrot.lane.b32.xlu1 %v1196_v47, %s4145_s26 }
 0xd08   :  { %3980 = vpow2.f32 %v2265_v49 }
 0xd12   :  { %v3981_v50 = vpop.eup %3980 }
 0xd13   :  { %v1200_v53 = vadd.f32 1.0, %v3981_v50 }
 0xd15   :  { %3982 = vrcp.f32 %v1200_v53 }
 0xd1f   :  { %v3983_v4 = vpop.eup %3982 }
 0xd20   :  { %1203 = vrot.lane.b32.xlu0 %v3983_v4, %s4144_s24 }
 0xd24   :  { %1210 = vrot.lane.b32.xlu0 %v3983_v4, %s4143_s2 }
 0xd78   :  { %v1206_v11 = vpop.permute.xlu1 %1205 }
 0xd92   :  { %v1204_v12 = vpop.permute.xlu0 %1203 }
 0xd93   :  { %v1207_v15 = vmul.f32 %v1206_v11, %v1204_v12 }
 0xd95   :  { %v1208_v17 = vadd.f32 %v1207_v15, %v1196_v47 }
 0xd96   :  { %v1211_v16 = vpop.permute.xlu0 %1210 }
 0xd97   :  { %3984 = vtanh.f32 %v1208_v17 }
 0xda1   :  { %v3985_v5 = vpop.eup %3984 }
 0xda2   :  { %v1212_v13 = vsub.f32 %v4587_v30, %v3985_v5 }
 0xda4   :  { %v1213_v19 = vmul.f32 %v1212_v13, %v1211_v16 }
 0xda6   :  { %v4649_v18 = vadd.f32 %v3985_v5, %v1213_v19 }
 0xda8   :  { %3012 = vmatmul.mubr.f32.vlgmr.msra.gmra.mrb[16].mxu0 %v4649_v18 }
 0xda9   :  { %3647 = vmatpush3.bf16.msra.mxu0 %v4537_v54  ;;  %3046 = vmatprep.mubr.msk.f32.mxu0 %vm4141_vm0, %v4142_v1 }
 0xdaa   :  { %3648 = vmatprep.subr.bf16.mxu0 %v4140_v0 }
 0xdad   :  { %3650 = vmatpush3.bf16.msra.mxu0 %v4540_v56 }
 0xdae   :  { %3651 = vmatprep.subr.bf16.mxu0 %v4140_v0 }
 0xdb1   :  { %3653 = vmatpush3.bf16.msra.mxu0 %v4544_v59 }
 0xdb2   :  { %3654 = vmatprep.subr.bf16.mxu0 %v4140_v0 }
 0xdb5   :  { %3656 = vmatpush3.bf16.msra.mxu0 %v4552_v9 }
 0xdb6   :  { %3657 = vmatprep.subr.bf16.mxu0 %v4140_v0 }
 0xdb9   :  { %3659 = vmatpush3.bf16.msra.mxu0 %v4556_v10 }
 0xdba   :  { %3660 = vmatprep.subr.bf16.mxu0 %v4140_v0 }
 0xdbd   :  { %3662 = vmatpush3.bf16.msra.mxu0 %v4560_v14 }
 0xdbe   :  { %3663 = vmatprep.subr.bf16.mxu0 %v4140_v0 }
 0xdc1   :  { %3665 = vmatpush3.bf16.msra.mxu0 %v4564_v7 }
 0xdc2   :  { %3666 = vmatprep.subr.bf16.mxu0 %v4140_v0 }
 0xdc5   :  { %3668 = vmatpush3.bf16.msra.mxu0 %v4572_v22 }
 0xdc6   :  { %3693 = vmatprep.subr.bf16.mxu0 %v4140_v0 }
 0xe7b   :  { %v1281_v28 = vpop.f32.mrb[16].mxu0 }
 0xe7c   :  { %v4676_v20 = vadd.f32 %v4673_v25, %v1281_v28  ;;  %v3013_v21 = vpop.f32.mrb[17].mxu0 }
 0xe7e   :  { %v1285_v23 = vmax.f32 %v4676_v20, 0.0  ;;  %v2111_v20 = vld [vmem:[#allocation10 + $0x68] sm:$0xff] }
 0xe80   :  { %v1287_v26 = vsel %vm257_vm3, %v4649_v18, %v1285_v23 }
 0xe81   :  { %3047 = vmatmul.mubr.f32.vlgmr.msra.gmra.mrb[18].mxu0 %v1287_v26 }
 0xe82   :  { %3695 = vmatpush3.bf16.msra.mxu0 %v4537_v54  ;;  %3116 = vmatprep.mubr.msk.f32.mxu0 %vm4141_vm0, %v4142_v1 }
 0xe83   :  { %3696 = vmatprep.subr.bf16.mxu0 %v4140_v0 }
 0xe86   :  { %3698 = vmatpush3.bf16.msra.mxu0 %v4540_v56 }
 0xe87   :  { %3699 = vmatprep.subr.bf16.mxu0 %v4140_v0 }
 0xe8a   :  { %3701 = vmatpush3.bf16.msra.mxu0 %v4544_v59 }
 0xe8b   :  { %3702 = vmatprep.subr.bf16.mxu0 %v4140_v0 }
 0xe8e   :  { %3704 = vmatpush3.bf16.msra.mxu0 %v4552_v9 }
 0xe8f   :  { %3705 = vmatprep.subr.bf16.mxu0 %v4140_v0 }
 0xe92   :  { %3707 = vmatpush3.bf16.msra.mxu0 %v4556_v10 }
 0xe93   :  { %3708 = vmatprep.subr.bf16.mxu0 %v4140_v0 }
 0xe96   :  { %3710 = vmatpush3.bf16.msra.mxu0 %v4560_v14 }
 0xe97   :  { %3711 = vmatprep.subr.bf16.mxu0 %v4140_v0 }
 0xe9a   :  { %3713 = vmatpush3.bf16.msra.mxu0 %v4564_v7 }
 0xe9b   :  { %3714 = vmatprep.subr.bf16.mxu0 %v4140_v0 }
 0xe9e   :  { %3716 = vmatpush3.bf16.msra.mxu0 %v4572_v22 }
 0xe9f   :  { %3741 = vmatprep.subr.bf16.mxu0 %v4140_v0 }
 0xf54   :  { %v1354_v29 = vpop.f32.mrb[18].mxu0 }
 0xf55   :  { %v1355_v30 = vadd.f32 %v4705_v27, %v1354_v29  ;;  %v3048_v32 = vpop.f32.mrb[19].mxu0 }
 0xf57   :  { %v2266_v33 = vmul.f32 -1.442695, %v1355_v30  ;;  %1366 = vrot.lane.b32.xlu0 %v1355_v30, %s4145_s26 }
 0xf59   :  { %3986 = vpow2.f32 %v2266_v33 }
 0xf63   :  { %v3987_v34 = vpop.eup %3986 }
 0xf64   :  { %v1361_v35 = vadd.f32 1.0, %v3987_v34 }
 0xf66   :  { %3988 = vrcp.f32 %v1361_v35 }
 0xf70   :  { %v3989_v36 = vpop.eup %3988 }
 0xf71   :  { %1364 = vrot.lane.b32.xlu1 %v3989_v36, %s4144_s24 }
 0xf75   :  { %1371 = vrot.lane.b32.xlu1 %v3989_v36, %s4143_s2 }
 0xfc9   :  { %v1367_v38 = vpop.permute.xlu0 %1366 }
 0xfe3   :  { %v1365_v42 = vpop.permute.xlu1 %1364 }
 0xfe4   :  { %v1368_v43 = vmul.f32 %v1367_v38, %v1365_v42 }
 0xfe6   :  { %v1369_v44 = vadd.f32 %v1368_v43, %v1355_v30 }
 0xfe7   :  { %v1372_v47 = vpop.permute.xlu1 %1371 }
 0xfe8   :  { %3990 = vtanh.f32 %v1369_v44 }
 0xff2   :  { %v3991_v46 = vpop.eup %3990 }
 0xff3   :  { %v1373_v41 = vsub.f32 %v4649_v18, %v3991_v46 }
 0xff5   :  { %v1374_v48 = vmul.f32 %v1373_v41, %v1372_v47 }
 0xff7   :  { %v4712_v49 = vadd.f32 %v3991_v46, %v1374_v48 }
 0xff9   :  { %3082 = vmatmul.mubr.f32.vlgmr.msra.gmra.mrb[12].mxu1 %v4712_v49 }
 0xffa   :  { %3719 = vmatpush3.bf16.msra.mxu1 %v4594_v37  ;;  %3151 = vmatprep.mubr.msk.f32.mxu1 %vm4141_vm0, %v4142_v1 }
 0xffb   :  { %3720 = vmatprep.subr.bf16.mxu1 %v4140_v0 }
 0xffe   :  { %3722 = vmatpush3.bf16.msra.mxu1 %v4597_v39 }
 0xfff   :  { %3723 = vmatprep.subr.bf16.mxu1 %v4140_v0 }
0x1002   :  { %3725 = vmatpush3.bf16.msra.mxu1 %v4606_v45 }
0x1003   :  { %3726 = vmatprep.subr.bf16.mxu1 %v4140_v0 }
0x1006   :  { %3728 = vmatpush3.bf16.msra.mxu1 %v4616_v55 }
0x1007   :  { %3729 = vmatprep.subr.bf16.mxu1 %v4140_v0 }
0x100a   :  { %3731 = vmatpush3.bf16.msra.mxu1 %v4622_v60 }
0x100b   :  { %3732 = vmatprep.subr.bf16.mxu1 %v4140_v0 }
0x100e   :  { %3734 = vmatpush3.bf16.msra.mxu1 %v4628_v63 }
0x100f   :  { %3735 = vmatprep.subr.bf16.mxu1 %v4140_v0 }
0x1012   :  { %3737 = vmatpush3.bf16.msra.mxu1 %v4634_v6 }
0x1013   :  { %3738 = vmatprep.subr.bf16.mxu1 %v4140_v0 }
0x1016   :  { %3740 = vmatpush3.bf16.msra.mxu1 %v4641_v40 }
0x1017   :  { %3765 = vmatprep.subr.bf16.mxu1 %v4140_v0 }
0x10cc   :  { %v1442_v50 = vpop.f32.mrb[12].mxu1 }
0x10cd   :  { %v4734_v51 = vadd.f32 %v4673_v25, %v1442_v50  ;;  %v3083_v52 = vpop.f32.mrb[13].mxu1 }
0x10cf   :  { %v1446_v53 = vmax.f32 %v4734_v51, 0.0 }
0x10d1   :  { %v1448_v57 = vsel %vm257_vm3, %v4712_v49, %v1446_v53 }
0x10d2   :  { %3117 = vmatmul.mubr.f32.vlgmr.msra.gmra.mrb[20].mxu0 %v1448_v57 }
0x10d3   :  { %3743 = vmatpush3.bf16.msra.mxu0 %v4537_v54  ;;  %3186 = vmatprep.mubr.msk.f32.mxu0 %vm4141_vm0, %v4142_v1 }
0x10d4   :  { %3744 = vmatprep.subr.bf16.mxu0 %v4140_v0 }
0x10d7   :  { %3746 = vmatpush3.bf16.msra.mxu0 %v4540_v56 }
0x10d8   :  { %3747 = vmatprep.subr.bf16.mxu0 %v4140_v0 }
0x10db   :  { %3749 = vmatpush3.bf16.msra.mxu0 %v4544_v59 }
0x10dc   :  { %3750 = vmatprep.subr.bf16.mxu0 %v4140_v0 }
0x10df   :  { %3752 = vmatpush3.bf16.msra.mxu0 %v4552_v9 }
0x10e0   :  { %3753 = vmatprep.subr.bf16.mxu0 %v4140_v0 }
0x10e3   :  { %3755 = vmatpush3.bf16.msra.mxu0 %v4556_v10 }
0x10e4   :  { %3756 = vmatprep.subr.bf16.mxu0 %v4140_v0 }
0x10e7   :  { %3758 = vmatpush3.bf16.msra.mxu0 %v4560_v14 }
0x10e8   :  { %3759 = vmatprep.subr.bf16.mxu0 %v4140_v0 }
0x10eb   :  { %3761 = vmatpush3.bf16.msra.mxu0 %v4564_v7 }
0x10ec   :  { %3762 = vmatprep.subr.bf16.mxu0 %v4140_v0 }
0x10ef   :  { %3764 = vmatpush3.bf16.msra.mxu0 %v4572_v22 }
0x10f0   :  { %3789 = vmatprep.subr.bf16.mxu0 %v4140_v0 }
0x11a5   :  { %v1515_v58 = vpop.f32.mrb[20].mxu0 }
0x11a6   :  { %v1516_v61 = vadd.f32 %v4705_v27, %v1515_v58  ;;  %v3118_v62 = vpop.f32.mrb[21].mxu0 }
0x11a8   :  { %v2267_v2 = vmul.f32 -1.442695, %v1516_v61  ;;  %1527 = vrot.lane.b32.xlu1 %v1516_v61, %s4145_s26 }
0x11aa   :  { %3992 = vpow2.f32 %v2267_v2 }
0x11b4   :  { %v3993_v3 = vpop.eup %3992 }
0x11b5   :  { %v1522_v4 = vadd.f32 1.0, %v3993_v3 }
0x11b7   :  { %3994 = vrcp.f32 %v1522_v4 }
0x11c1   :  { %v3995_v8 = vpop.eup %3994 }
0x11c2   :  { %1525 = vrot.lane.b32.xlu0 %v3995_v8, %s4144_s24 }
0x11c6   :  { %1532 = vrot.lane.b32.xlu0 %v3995_v8, %s4143_s2 }
0x121a   :  { %v1528_v31 = vpop.permute.xlu1 %1527 }
0x1234   :  { %v1526_v11 = vpop.permute.xlu0 %1525 }
0x1235   :  { %v1529_v12 = vmul.f32 %v1528_v31, %v1526_v11 }
0x1237   :  { %v1530_v15 = vadd.f32 %v1529_v12, %v1516_v61 }
0x1238   :  { %v1533_v13 = vpop.permute.xlu0 %1532 }
0x1239   :  { %3996 = vtanh.f32 %v1530_v15 }
0x1243   :  { %v3997_v17 = vpop.eup %3996 }
0x1244   :  { %v1534_v5 = vsub.f32 %v4712_v49, %v3997_v17 }
0x1246   :  { %v1535_v16 = vmul.f32 %v1534_v5, %v1533_v13  ;;  %v2101_v5 = vld [vmem:[#allocation10 + $0x18] sm:$0xff] }
0x1248   :  { %v4765_v19 = vadd.f32 %v3997_v17, %v1535_v16  ;;  %v2100_v17 = vld [vmem:[#allocation10 + $0x10] sm:$0xff]  ;;  %v2102_v16 = vld [vmem:[#allocation10 + $0x20] sm:$0xff] }
0x124a   :  { %3152 = vmatmul.mubr.f32.vlgmr.msra.gmra.mrb[14].mxu1 %v4765_v19 }
0x124b   :  { %3767 = vmatpush3.bf16.msra.mxu1 %v4594_v37  ;;  %3221 = vmatprep.mubr.msk.f32.mxu1 %vm4141_vm0, %v4142_v1 }
0x124c   :  { %3768 = vmatprep.subr.bf16.mxu1 %v4140_v0 }
0x124f   :  { %3770 = vmatpush3.bf16.msra.mxu1 %v4597_v39 }
0x1250   :  { %3771 = vmatprep.subr.bf16.mxu1 %v4140_v0 }
0x1253   :  { %3773 = vmatpush3.bf16.msra.mxu1 %v4606_v45 }
0x1254   :  { %3774 = vmatprep.subr.bf16.mxu1 %v4140_v0 }
0x1257   :  { %3776 = vmatpush3.bf16.msra.mxu1 %v4616_v55 }
0x1258   :  { %3777 = vmatprep.subr.bf16.mxu1 %v4140_v0 }
0x125b   :  { %3779 = vmatpush3.bf16.msra.mxu1 %v4622_v60 }
0x125c   :  { %3780 = vmatprep.subr.bf16.mxu1 %v4140_v0 }
0x125f   :  { %3782 = vmatpush3.bf16.msra.mxu1 %v4628_v63 }
0x1260   :  { %3783 = vmatprep.subr.bf16.mxu1 %v4140_v0 }
0x1263   :  { %3785 = vmatpush3.bf16.msra.mxu1 %v4634_v6 }
0x1264   :  { %3786 = vmatprep.subr.bf16.mxu1 %v4140_v0 }
0x1267   :  { %3788 = vmatpush3.bf16.msra.mxu1 %v4641_v40 }
0x1268   :  { %3813 = vmatprep.subr.bf16.mxu1 %v4140_v0 }
0x131d   :  { %v1603_v18 = vpop.f32.mrb[14].mxu1 }
0x131e   :  { %v4787_v28 = vadd.f32 %v4673_v25, %v1603_v18  ;;  %v3153_v21 = vpop.f32.mrb[15].mxu1  ;;  %v2105_v18 = vld [vmem:[#allocation10 + $0x38] sm:$0xff] }
0x1320   :  { %v1607_v26 = vmax.f32 %v4787_v28, 0.0 }
0x1322   :  { %v1609_v29 = vsel %vm257_vm3, %v4765_v19, %v1607_v26 }
0x1323   :  { %3187 = vmatmul.mubr.f32.vlgmr.msra.gmra.mrb[22].mxu0 %v1609_v29  ;;  %v2106_v29 = vld [vmem:[#allocation10 + $0x40] sm:$0xff] }
0x1324   :  { %3791 = vmatpush3.bf16.msra.mxu0 %v4537_v54  ;;  %3256 = vmatprep.mubr.msk.f32.mxu0 %vm4141_vm0, %v4142_v1 }
0x1325   :  { %3792 = vmatprep.subr.bf16.mxu0 %v4140_v0 }
0x1328   :  { %3794 = vmatpush3.bf16.msra.mxu0 %v4540_v56 }
0x1329   :  { %3795 = vmatprep.subr.bf16.mxu0 %v4140_v0 }
0x132c   :  { %3797 = vmatpush3.bf16.msra.mxu0 %v4544_v59 }
0x132d   :  { %3798 = vmatprep.subr.bf16.mxu0 %v4140_v0 }
0x1330   :  { %3800 = vmatpush3.bf16.msra.mxu0 %v4552_v9 }
0x1331   :  { %3801 = vmatprep.subr.bf16.mxu0 %v4140_v0 }
0x1334   :  { %3803 = vmatpush3.bf16.msra.mxu0 %v4556_v10 }
0x1335   :  { %3804 = vmatprep.subr.bf16.mxu0 %v4140_v0 }
0x1338   :  { %3806 = vmatpush3.bf16.msra.mxu0 %v4560_v14 }
0x1339   :  { %3807 = vmatprep.subr.bf16.mxu0 %v4140_v0 }
0x133c   :  { %3809 = vmatpush3.bf16.msra.mxu0 %v4564_v7 }
0x133d   :  { %3810 = vmatprep.subr.bf16.mxu0 %v4140_v0 }
0x1340   :  { %3812 = vmatpush3.bf16.msra.mxu0 %v4572_v22 }
0x1341   :  { %3837 = vmatprep.subr.bf16.mxu0 %v4140_v0 }
0x13f6   :  { %v1676_v30 = vpop.f32.mrb[22].mxu0 }
0x13f7   :  { %v1677_v32 = vadd.f32 %v4705_v27, %v1676_v30  ;;  %v3188_v33 = vpop.f32.mrb[23].mxu0  ;;  %v2107_v30 = vld [vmem:[#allocation10 + $0x48] sm:$0xff] }
0x13f8   :  { %v3901_v24 = vpack.c.bf16 %v2107_v30, %v2106_v29  ;;  %v2109_v33 = vld [vmem:[#allocation10 + $0x58] sm:$0xff] }
0x13f9   :  { %v2268_v34 = vmul.f32 -1.442695, %v1677_v32  ;;  %1688 = vrot.lane.b32.xlu0 %v1677_v32, %s4145_s26 }
0x13fb   :  { %3998 = vpow2.f32 %v2268_v34 }
0x1405   :  { %v3999_v35 = vpop.eup %3998 }
0x1406   :  { %v1683_v36 = vadd.f32 1.0, %v3999_v35  ;;  %v2110_v35 = vld [vmem:[#allocation10 + $0x60] sm:$0xff] }
0x1408   :  { %4000 = vrcp.f32 %v1683_v36  ;;  %v2112_v36 = vld [vmem:[#allocation10 + $0x70] sm:$0xff] }
0x1412   :  { %v4001_v38 = vpop.eup %4000 }
0x1413   :  { %1686 = vrot.lane.b32.xlu1 %v4001_v38, %s4144_s24 }
0x1417   :  { %1693 = vrot.lane.b32.xlu1 %v4001_v38, %s4143_s2  ;;  %v2113_v38 = vld [vmem:[#allocation10 + $0x78] sm:$0xff] }
0x146b   :  { %v1689_v42 = vpop.permute.xlu0 %1688 }
0x1485   :  { %v1687_v43 = vpop.permute.xlu1 %1686 }
0x1486   :  { %v1690_v44 = vmul.f32 %v1689_v42, %v1687_v43  ;;  %v3913_v42 = vpack.c.bf16 %v2113_v38, %v2112_v36 }
0x1488   :  { %v1691_v46 = vadd.f32 %v1690_v44, %v1677_v32  ;;  %v2108_v32 = vld [vmem:[#allocation10 + $0x50] sm:$0xff] }
0x1489   :  { %v1694_v48 = vpop.permute.xlu1 %1693  ;;  %v3905_v34 = vpack.c.bf16 %v2109_v33, %v2108_v32 }
0x148a   :  { %4002 = vtanh.f32 %v1691_v46 }
0x1494   :  { %v4003_v41 = vpop.eup %4002 }
0x1495   :  { %v1695_v47 = vsub.f32 %v4765_v19, %v4003_v41  ;;  %v2104_v19 = vld [vmem:[#allocation10 + $0x30] sm:$0xff] }
0x1496   :  { %v3897_v21 = vpack.c.bf16 %v2105_v18, %v2104_v19 }
0x1497   :  { %v1696_v49 = vmul.f32 %v1695_v47, %v1694_v48 }
0x1499   :  { %v1697_v50 = vadd.f32 %v4003_v41, %v1696_v49 }
0x149b   :  { %3222 = vmatmul.mubr.f32.vlgmr.msra.gmra.mrb[16].mxu1 %v1697_v50 }
0x149c   :  { %3815 = vmatpush3.bf16.msra.mxu1 %v4594_v37  ;;  %3291 = vmatprep.mubr.msk.f32.mxu1 %vm4141_vm0, %v4142_v1 }
0x149d   :  { %3816 = vmatprep.subr.bf16.mxu1 %v4140_v0 }
0x14a0   :  { %3818 = vmatpush3.bf16.msra.mxu1 %v4597_v39 }
0x14a1   :  { %3819 = vmatprep.subr.bf16.mxu1 %v4140_v0 }
0x14a4   :  { %3821 = vmatpush3.bf16.msra.mxu1 %v4606_v45 }
0x14a5   :  { %3822 = vmatprep.subr.bf16.mxu1 %v4140_v0 }
0x14a8   :  { %3824 = vmatpush3.bf16.msra.mxu1 %v4616_v55 }
0x14a9   :  { %3825 = vmatprep.subr.bf16.mxu1 %v4140_v0 }
0x14ac   :  { %3827 = vmatpush3.bf16.msra.mxu1 %v4622_v60 }
0x14ad   :  { %3828 = vmatprep.subr.bf16.mxu1 %v4140_v0 }
0x14b0   :  { %3830 = vmatpush3.bf16.msra.mxu1 %v4628_v63 }
0x14b1   :  { %3831 = vmatprep.subr.bf16.mxu1 %v4140_v0 }
0x14b4   :  { %3833 = vmatpush3.bf16.msra.mxu1 %v4634_v6 }
0x14b5   :  { %3834 = vmatprep.subr.bf16.mxu1 %v4140_v0 }
0x14b8   :  { %3836 = vmatpush3.bf16.msra.mxu1 %v4641_v40 }
0x14b9   :  { %3861 = vmatprep.subr.bf16.mxu1 %v4140_v0 }
0x156e   :  { %v1764_v52 = vpop.f32.mrb[16].mxu1 }
0x156f   :  { %v4837_v57 = vadd.f32 %v4673_v25, %v1764_v52  ;;  %v3223_v58 = vpop.f32.mrb[17].mxu1 }
0x1571   :  { %v1768_v61 = vmax.f32 %v4837_v57, 0.0 }
0x1573   :  { %v1770_v62 = vsel %vm257_vm3, %v1697_v50, %v1768_v61 }
0x1574   :  { %3257 = vmatmul.mubr.f32.vlgmr.msra.gmra.mrb[24].mxu0 %v1770_v62 }
0x1575   :  { %3839 = vmatpush3.bf16.msra.mxu0 %v4537_v54  ;;  %3326 = vmatprep.mubr.msk.f32.mxu0 %vm4141_vm0, %v4142_v1 }
0x1576   :  { %3840 = vmatprep.subr.bf16.mxu0 %v4140_v0 }
0x1579   :  { %3842 = vmatpush3.bf16.msra.mxu0 %v4540_v56 }
0x157a   :  { %3843 = vmatprep.subr.bf16.mxu0 %v4140_v0 }
0x157d   :  { %3845 = vmatpush3.bf16.msra.mxu0 %v4544_v59 }
0x157e   :  { %3846 = vmatprep.subr.bf16.mxu0 %v4140_v0 }
0x1581   :  { %3848 = vmatpush3.bf16.msra.mxu0 %v4552_v9 }
0x1582   :  { %3849 = vmatprep.subr.bf16.mxu0 %v4140_v0 }
0x1585   :  { %3851 = vmatpush3.bf16.msra.mxu0 %v4556_v10 }
0x1586   :  { %3852 = vmatprep.subr.bf16.mxu0 %v4140_v0 }
0x1589   :  { %3854 = vmatpush3.bf16.msra.mxu0 %v4560_v14 }
0x158a   :  { %3855 = vmatprep.subr.bf16.mxu0 %v4140_v0 }
0x158d   :  { %3857 = vmatpush3.bf16.msra.mxu0 %v4564_v7 }
0x158e   :  { %3858 = vmatprep.subr.bf16.mxu0 %v4140_v0 }
0x1591   :  { %3860 = vmatpush3.bf16.msra.mxu0 %v4572_v22 }
0x1647   :  { %v1837_v54 = vpop.f32.mrb[24].mxu0 }
0x1648   :  { %v1838_v56 = vadd.f32 %v4705_v27, %v1837_v54  ;;  %v3258_v59 = vpop.f32.mrb[25].mxu0 }
0x164a   :  { %v2269_v9 = vmul.f32 -1.442695, %v1838_v56  ;;  %1849 = vrot.lane.b32.xlu1 %v1838_v56, %s4145_s26 }
0x164c   :  { %4004 = vpow2.f32 %v2269_v9 }
0x1656   :  { %v4005_v10 = vpop.eup %4004 }
0x1657   :  { %v1844_v2 = vadd.f32 1.0, %v4005_v10 }
0x1659   :  { %4006 = vrcp.f32 %v1844_v2 }
0x1663   :  { %v4007_v14 = vpop.eup %4006 }
0x1664   :  { %1847 = vrot.lane.b32.xlu0 %v4007_v14, %s4144_s24 }
0x1668   :  { %1854 = vrot.lane.b32.xlu0 %v4007_v14, %s4143_s2 }
0x16bc   :  { %v1850_v7 = vpop.permute.xlu1 %1849 }
0x16d6   :  { %v1848_v3 = vpop.permute.xlu0 %1847 }
0x16d7   :  { %v1851_v4 = vmul.f32 %v1850_v7, %v1848_v3 }
0x16d9   :  { %v1852_v22 = vadd.f32 %v1851_v4, %v1838_v56 }
0x16da   :  { %v1855_v11 = vpop.permute.xlu0 %1854 }
0x16db   :  { %4008 = vtanh.f32 %v1852_v22 }
0x16e5   :  { %v4009_v8 = vpop.eup %4008 }
0x16e6   :  { %v1856_v31 = vsub.f32 %v1697_v50, %v4009_v8 }
0x16e8   :  { %v1857_v12 = vmul.f32 %v1856_v31, %v1855_v11 }
0x16ea   :  { %v4865_v15 = vadd.f32 %v4009_v8, %v1857_v12 }
0x16ec   :  { %3292 = vmatmul.mubr.f32.vlgmr.msra.gmra.mrb[18].mxu1 %v4865_v15 }
0x16ed   :  { %3863 = vmatpush3.bf16.msra.mxu1 %v4594_v37  ;;  %3361 = vmatprep.mubr.msk.f32.mxu1 %vm4141_vm0, %v4142_v1  ;;  %v2098_v1 = vld [vmem:[#allocation10] sm:$0xff]  ;;  %v2099_v37 = vld [vmem:[#allocation10 + $0x8] sm:$0xff] }
0x16ee   :  { %3864 = vmatprep.subr.bf16.mxu1 %v4140_v0 }
0x16f1   :  { %3866 = vmatpush3.bf16.msra.mxu1 %v4597_v39  ;;  %v3885_v39 = vpack.c.bf16 %v2099_v37, %v2098_v1 }
0x16f2   :  { %3867 = vmatprep.subr.bf16.mxu1 %v4140_v0 }
0x16f3   :  { %3886 = vmatprep.subr.bf16.mxu0 %v3885_v39 }
0x16f5   :  { %3869 = vmatpush3.bf16.msra.mxu1 %v4606_v45 }
0x16f6   :  { %3870 = vmatprep.subr.bf16.mxu1 %v4140_v0 }
0x16f9   :  { %3872 = vmatpush3.bf16.msra.mxu1 %v4616_v55 }
0x16fa   :  { %3873 = vmatprep.subr.bf16.mxu1 %v4140_v0 }
0x16fd   :  { %3875 = vmatpush3.bf16.msra.mxu1 %v4622_v60 }
0x16fe   :  { %3876 = vmatprep.subr.bf16.mxu1 %v4140_v0 }
0x1701   :  { %3878 = vmatpush3.bf16.msra.mxu1 %v4628_v63  ;;  %v3889_v63 = vpack.c.bf16 %v2101_v5, %v2100_v17 }
0x1702   :  { %3879 = vmatprep.subr.bf16.mxu1 %v4140_v0 }
0x1705   :  { %3881 = vmatpush3.bf16.msra.mxu1 %v4634_v6 }
0x1706   :  { %3882 = vmatprep.subr.bf16.mxu1 %v4140_v0  ;;  %v2103_v0 = vld [vmem:[#allocation10 + $0x28] sm:$0xff] }
0x1709   :  { %3884 = vmatpush3.bf16.msra.mxu1 %v4641_v40  ;;  %v3893_v40 = vpack.c.bf16 %v2103_v0, %v2102_v16 }
0x17bf   :  { %v1925_v45 = vpop.f32.mrb[18].mxu1 }
0x17c0   :  { %v1926_v55 = vadd.f32 %v4673_v25, %v1925_v45  ;;  %v3293_v60 = vpop.f32.mrb[19].mxu1 }
0x17c2   :  { %v1929_v13 = vmax.f32 %v1926_v55, 0.0 }
0x17c4   :  { %v1931_v6 = vsel %vm257_vm3, %v4865_v15, %v1929_v13 }
0x17c5   :  { %3327 = vmatmul.mubr.f32.vlgmr.msra.gmra.mrb[26].mxu0 %v1931_v6 }
0x17c6   :  { %3888 = vmatpush3.bf16.msra.mxu0 %v3885_v39  ;;  %3396 = vmatprep.mubr.f32.mxu0 %v1285_v23  ;;  %v3909_v23 = vpack.c.bf16 %v2111_v20, %v2110_v35 }
0x17c7   :  { %3890 = vmatprep.subr.bf16.mxu0 %v3889_v63 }
0x17ca   :  { %3892 = vmatpush3.bf16.msra.mxu0 %v3889_v63 }
0x17cb   :  { %3894 = vmatprep.subr.bf16.mxu0 %v3893_v40 }
0x17ce   :  { %3896 = vmatpush3.bf16.msra.mxu0 %v3893_v40 }
0x17cf   :  { %3898 = vmatprep.subr.bf16.mxu0 %v3897_v21 }
0x17d2   :  { %3900 = vmatpush3.bf16.msra.mxu0 %v3897_v21 }
0x17d3   :  { %3902 = vmatprep.subr.bf16.mxu0 %v3901_v24 }
0x17d6   :  { %3904 = vmatpush3.bf16.msra.mxu0 %v3901_v24 }
0x17d7   :  { %3906 = vmatprep.subr.bf16.mxu0 %v3905_v34 }
0x17da   :  { %3908 = vmatpush3.bf16.msra.mxu0 %v3905_v34 }
0x17db   :  { %3910 = vmatprep.subr.bf16.mxu0 %v3909_v23 }
0x17de   :  { %3912 = vmatpush3.bf16.msra.mxu0 %v3909_v23 }
0x17df   :  { %3914 = vmatprep.subr.bf16.mxu0 %v3913_v42 }
0x17e2   :  { %3916 = vmatpush3.bf16.msra.mxu0 %v3913_v42 }
0x17e5   :  { %3397 = vmatmul.mubr.f32.vlgmr.msra.gmra.mrb[28].mxu0 %v1446_v53  ;;  %v2271_v53 = vld [vmem:[%s4932_s11] ss:$0 sm:$0xff]  ;;  %s4146_s11 = smov [#allocation12]  }
0x17e6   :  { %3399 = vmatprep.mubr.f32.mxu0 %v1607_v26  ;;  %s2227_s1 = sshll.u32 %s4146_s11, 4  ;;  %s2228_s1 = int_to_ptr.vmem [resolvable:$true] %s2227_s1 }
0x17e7   :  { %s4104_s25 = scalar_lea.vmem %s2228_s1, 768  ;;  %p4109_p5 = scmp.lt.s32.totalorder %s2228_s1, %s2228_s1 }
0x17e8   :  { %p4105_p4 = scmp.ne.s32.totalorder %s2228_s1, %s4104_s25  ;;  %p4110_p6 = scmp.lt.s32.totalorder %s4104_s25, %s4104_s25 }
0x17e9   :  { %3400 = vmatmul.mubr.f32.gmra.mrb[30].mxu0 %v1768_v61 }
0x17ea   :  { %3402 = vmatprep.mubr.f32.mxu0 %v1929_v13  ;;  %p4111_p7 = por %p4110_p6, %p4109_p5 }
0x17ec   :  { %p4112_p8 = pnand %p4111_p7, %p4105_p4 }
0x1898   :  { %v1998_v43 = vpop.f32.mrb[26].mxu0 }
0x1899   :  { %v1999_v44 = vadd.f32 %v4705_v27, %v1998_v43  ;;  %v3328_v46 = vpop.f32.mrb[27].mxu0 }
0x189b   :  { %v2270_v41 = vmul.f32 -1.442695, %v1999_v44  ;;  %2010 = vrot.lane.b32.xlu0 %v1999_v44, %s4145_s26 }
0x189d   :  { %4010 = vpow2.f32 %v2270_v41 }
0x18a7   :  { %v4011_v47 = vpop.eup %4010 }
0x18a8   :  { %v2005_v48 = vadd.f32 1.0, %v4011_v47 }
0x18aa   :  { %4012 = vrcp.f32 %v2005_v48 }
0x18b4   :  { %v4013_v51 = vpop.eup %4012 }
0x18b5   :  { %2008 = vrot.lane.b32.xlu1 %v4013_v51, %s4144_s24 }
0x18b8   :  { %v3398_v28 = vpop.f32.mrb[28].mxu0 }
0x18b9   :  { %v2193_v26 = vadd.f32 %v3398_v28, %v2271_v53  ;;  %v2187_v49 = vpop.f32.mrb[29].mxu0  ;;  %2015 = vrot.lane.b32.xlu1 %v4013_v51, %s4143_s2 }
0x18ba   :  { %v2188_v27 = vadd.f32 %v2271_v53, %v2187_v49 }
0x18bb   :  { %2217 = vst [vmem:[#allocation12 + $0x8] sm:$0xff] %v2193_v26 }
0x18bc   :  { %2216 = vst [vmem:[#allocation12] sm:$0xff] %v2188_v27  ;;  %v3401_v50 = vpop.f32.mrb[30].mxu0 }
0x18bd   :  { %v2203_v52 = vadd.f32 %v3401_v50, %v2271_v53  ;;  %v2197_v57 = vpop.f32.mrb[31].mxu0 }
0x18be   :  { %v2198_v58 = vadd.f32 %v2271_v53, %v2197_v57 }
0x18bf   :  { %2219 = vst [vmem:[#allocation12 + $0x18] sm:$0xff] %v2203_v52 }
0x18c0   :  { %2218 = vst [vmem:[#allocation12 + $0x10] sm:$0xff] %v2198_v58 }
0x190d   :  { %v2011_v61 = vpop.permute.xlu0 %2010 }
0x1927   :  { %v2009_v62 = vpop.permute.xlu1 %2008 }
0x1928   :  { %v2012_v54 = vmul.f32 %v2011_v61, %v2009_v62 }
0x192a   :  { %v2013_v56 = vadd.f32 %v2012_v54, %v1999_v44 }
0x192b   :  { %v2016_v10 = vpop.permute.xlu1 %2015 }
0x192c   :  { %4014 = vtanh.f32 %v2013_v56 }
0x1936   :  { %v4015_v59 = vpop.eup %4014 }
0x1937   :  { %v2017_v9 = vsub.f32 %v4865_v15, %v4015_v59 }
0x1939   :  { %v2018_v2 = vmul.f32 %v2017_v9, %v2016_v10 }
0x193b   :  { %v2019_v14 = vadd.f32 %v4015_v59, %v2018_v2 }
0x193d   :  { %3362 = vmatmul.mubr.f32.vlgmr.msra.gmra.mrb[20].mxu1 %v2019_v14 }
0x1a10   :  { %v2086_v7 = vpop.f32.mrb[20].mxu1 }
0x1a11   :  { %v2087_v3 = vadd.f32 %v4673_v25, %v2086_v7  ;;  %v3363_v4 = vpop.f32.mrb[21].mxu1 }
0x1a13   :  { %v2090_v22 = vmax.f32 %v2087_v3, 0.0 }
0x1a15   :  { %3403 = vmatmul.mubr.f32.gmra.mrb[32].mxu0 %v2090_v22 }
0x1ae8   :  { %v3404_v8 = vpop.f32.mrb[32].mxu0 }
0x1ae9   :  { %v2213_v31 = vadd.f32 %v3404_v8, %v2271_v53  ;;  %v2207_v11 = vpop.f32.mrb[33].mxu0 }
0x1aea   :  { %v2208_v12 = vadd.f32 %v2271_v53, %v2207_v11 }
0x1aeb   :  { %2221 = vst [vmem:[#allocation12 + $0x28] sm:$0xff] %v2213_v31 }
0x1aec   :  { %2220 = vst [vmem:[#allocation12 + $0x20] sm:$0xff] %v2208_v12 }
0x1aed   :  { %4115 = shalt.err (!%p4112_p8)
}
0x1aee   :  { %s4116_s26 = scalar_lea.hbm %s4933_s12, 768 }
0x1aef   :  { %p4117_p9 = scmp.ne.s32.totalorder %s4933_s12, %s4116_s26  ;;  %p4120_p10 = scmp.lt.u32.totalorder %s4116_s26, %s4933_s12 }
0x1af1   :  { %p4122_p11 = pnand %p4120_p10, %p4117_p9 }
0x1af3   :  { %4125 = shalt.err (!%p4122_p11)
}
0x1af4   :  { %2233 = dma.vmem_to_hbm [thread:$0]  %s2228_s1, 768, %s4933_s12, [#allocation6], %s4136_s15, %s4136_s15, %s4137_s16  }
0x1af5   :  { %4132 = dma.done.wait [#allocation6], 768  }
0x1af6   :  { %4133 = vsyncadd [#allocation6], 4294966528 }
0x1af7   :  { %2237 = vsyncpa [#allocation5], 1 }
0x1af8   :  { %2238 = vsyncpa [#allocation8], 1 }
0x1af9   :  { %2239 = vsyncpa [#allocation11], 1 }
0x1afa   :  { %2240 = vsyncpa [#allocation6], 1 }

</bundles_post_ra>
